<compile_context>
chip_gen: v7x
topology: tpu7x:2x2x1
jax: 0.10.0
libtpu: 0.0.40
codegen_flags: <defaults>
</compile_context>

<pallas_src>
import functools

import jax
import jax.numpy as jnp
from jax.experimental import pallas as pl
from jax.experimental.pallas import tpu as pltpu


# ----------------------------------------------------------------------------
# Fused Pallas kernel: L LSTM layers + final FC, single invocation, no grid
# ----------------------------------------------------------------------------
def fused_lstm_fc_kernel(x_ref, w_ref, b_ref, o_ref, seq_scr, *,
                         num_layers, hidden, seq_len, batch, input_size, out_size):
    """x_ref   : (T*B, I)  f32, time-major rows (row = t*B + b)
    w_ref   : (rows, 4H) bf16 packed slab:
                 per layer  -> [w_ih_T (in_dim rows) ; w_hh_T (H rows)]
                 then       -> fc_w_T padded to 4H lanes (H rows)
              g-gate columns of the LSTM weights are pre-scaled by 2.
    b_ref   : (L+1, 4H) f32: row l = (b_ih + b_hh) of layer l (g cols pre-scaled by 2),
              last row = fc bias padded to 4H lanes.
    o_ref   : (B, out_size) f32 output
    seq_scr : (T*B, H) f32 VMEM scratch, time-major inter-layer hidden sequence.
    Gate order follows PyTorch nn.LSTM: i, f, g, o.
    """
    H = hidden
    T = seq_len
    B = batch

    # Static row offsets into the packed weight slab.
    offs = []
    r = 0
    for layer in range(num_layers):
        in_dim = input_size if layer == 0 else H
        offs.append((r, in_dim, r + in_dim))
        r += in_dim + H
    fc_start = r

    h_last = None
    for layer in range(num_layers):
        wih_start, in_dim, whh_start = offs[layer]
        wih = w_ref[wih_start:wih_start + in_dim, :]     # (in_dim, 4H) bf16
        whh = w_ref[whh_start:whh_start + H, :]          # (H, 4H)      bf16
        bias = b_ref[layer:layer + 1, :]                 # (1, 4H)      f32

        # ---- hoisted input projection over ALL timesteps: one batched MXU matmul ----
        if layer == 0:
            flat = x_ref[...]                            # (T*B, I) time-major
        else:
            flat = seq_scr[...]                          # (T*B, H) time-major
        gin = jnp.dot(flat.astype(jnp.bfloat16), wih,
                      preferred_element_type=jnp.float32) + bias   # (T*B, 4H) f32

        # ---- sequential recurrence: only h @ W_hh + gating per timestep ----
        h = jnp.zeros((B, H), jnp.float32)
        c = jnp.zeros((B, H), jnp.float32)
        for t in range(T):
            gates = gin[t * B:(t + 1) * B, :] + jnp.dot(
                h.astype(jnp.bfloat16), whh, preferred_element_type=jnp.float32)
            sg = jax.nn.sigmoid(gates)                   # ONE full-lane (B,4H) EUP pass
            i_g = sg[:, 0:H]
            f_g = sg[:, H:2 * H]
            g_g = 2.0 * sg[:, 2 * H:3 * H] - 1.0         # tanh via sigmoid (g pre-scaled x2)
            o_g = sg[:, 3 * H:4 * H]
            c = f_g * c + i_g * g_g
            h = o_g * (2.0 * jax.nn.sigmoid(2.0 * c) - 1.0)   # tanh(c) via sigmoid
            if layer + 1 < num_layers:
                # time-major contiguous rows; last layer never materializes its sequence
                seq_scr[pl.ds(t * B, B), :] = h
        h_last = h

    # ---- fused final FC on the last timestep's hidden state ----
    fc_w = w_ref[fc_start:fc_start + H, :]               # (H, 4H) bf16, cols >= O are 0
    fc_b = b_ref[num_layers:num_layers + 1, :]           # (1, 4H) f32, cols >= O are 0
    fc_full = jnp.dot(h_last.astype(jnp.bfloat16), fc_w,
                      preferred_element_type=jnp.float32) + fc_b
    o_ref[...] = fc_full[:, :out_size]


# ----------------------------------------------------------------------------
# Wrapper: weight packing / pre-scaling + pallas_call
# ----------------------------------------------------------------------------
def lstm_forward(x, params):
    """Full forward matching the PyTorch LSTM module.

    x: (B, T, input_size) float32, batch_first. Returns (B, output_size) float32.
    """
    B, T, I = x.shape
    layers = params["lstm_layers"]
    L = len(layers)
    H = layers[0][1].shape[0]
    G = 4 * H                      # lane-dense when 4H is a multiple of 128 (H=32)
    fc_w_t, fc_b = params["fc"]    # (H, O), (1, O)
    O = fc_w_t.shape[1]

    # Time-major flatten once in XLA (1 KiB array): row = t*B + b.
    x_tm = jnp.transpose(x, (1, 0, 2)).reshape(T * B, I)

    # Pre-scale the g-gate columns by 2 so tanh(g) = 2*sigmoid(2g) - 1 in-kernel.
    def scale_g(w):
        return w.at[:, 2 * H:3 * H].multiply(2.0)

    w_rows, b_rows = [], []
    for (wih_t, whh_t, bias) in layers:
        w_rows += [scale_g(wih_t), scale_g(whh_t)]
        b_rows.append(scale_g(bias))
    fc_w_pad = jnp.zeros((H, G), jnp.float32).at[:, :O].set(fc_w_t)
    fc_b_pad = jnp.zeros((1, G), jnp.float32).at[:, :O].set(fc_b)
    w_rows.append(fc_w_pad)
    b_rows.append(fc_b_pad)
    w_slab = jnp.concatenate(w_rows, axis=0).astype(jnp.bfloat16)   # (rows, 4H) bf16
    b_slab = jnp.concatenate(b_rows, axis=0)                        # (L+1, 4H) f32

    kernel = functools.partial(
        fused_lstm_fc_kernel, num_layers=L, hidden=H, seq_len=T,
        batch=B, input_size=I, out_size=O,
    )
    vmem = pl.BlockSpec(memory_space=pltpu.MemorySpace.VMEM)
    return pl.pallas_call(
        kernel,
        out_shape=jax.ShapeDtypeStruct((B, O), jnp.float32),
        in_specs=[vmem, vmem, vmem],
        out_specs=vmem,
        scratch_shapes=[pltpu.VMEM((T * B, H), jnp.float32)],
    )(x_tm, w_slab, b_slab)


# ----------------------------------------------------------------------------
# Deterministic parameter construction (PyTorch-style uniform(-k, k), k=1/sqrt(H))
# ----------------------------------------------------------------------------
def init_params(key, input_size, hidden_size, num_layers, output_size):
    k = 1.0 / jnp.sqrt(jnp.float32(hidden_size))
    layers = []
    for layer in range(num_layers):
        in_dim = input_size if layer == 0 else hidden_size
        key, k1, k2, k3, k4 = jax.random.split(key, 5)
        w_ih = jax.random.uniform(k1, (4 * hidden_size, in_dim), jnp.float32, -k, k)
        w_hh = jax.random.uniform(k2, (4 * hidden_size, hidden_size), jnp.float32, -k, k)
        b_ih = jax.random.uniform(k3, (4 * hidden_size,), jnp.float32, -k, k)
        b_hh = jax.random.uniform(k4, (4 * hidden_size,), jnp.float32, -k, k)
        layers.append(
            (w_ih.T, w_hh.T, (b_ih + b_hh).reshape(1, 4 * hidden_size))
        )
    key, k5, k6 = jax.random.split(key, 3)
    kf = 1.0 / jnp.sqrt(jnp.float32(hidden_size))
    w_fc = jax.random.uniform(k5, (output_size, hidden_size), jnp.float32, -kf, kf)
    b_fc = jax.random.uniform(k6, (output_size,), jnp.float32, -kf, kf)
    return {"lstm_layers": layers, "fc": (w_fc.T, b_fc.reshape(1, output_size))}


# ----------------------------------------------------------------------------
# Pure-JAX reference (mirrors torch.nn.LSTM + Linear semantics), f32, unscaled
# ----------------------------------------------------------------------------
def reference_forward(x, params):
    B, T, _ = x.shape
    seq = x
    for (wih_t, whh_t, bias) in params["lstm_layers"]:
        H = whh_t.shape[0]
        h = jnp.zeros((B, H), jnp.float32)
        c = jnp.zeros((B, H), jnp.float32)
        outs = []
        for t in range(T):
            gates = seq[:, t, :] @ wih_t + h @ whh_t + bias
            i_g = jax.nn.sigmoid(gates[:, 0:H])
            f_g = jax.nn.sigmoid(gates[:, H:2 * H])
            g_g = jnp.tanh(gates[:, 2 * H:3 * H])
            o_g = jax.nn.sigmoid(gates[:, 3 * H:4 * H])
            c = f_g * c + i_g * g_g
            h = o_g * jnp.tanh(c)
            outs.append(h)
        seq = jnp.stack(outs, axis=1)
    w_fc_t, b_fc = params["fc"]
    return seq[:, -1, :] @ w_fc_t + b_fc


if __name__ == "__main__":
    # Small shapes consistent with the module's forward pass.
    B, T = 2, 8
    input_size, hidden_size, num_layers, output_size = 16, 32, 2, 4

    key = jax.random.PRNGKey(0)
    key, xk, pk = jax.random.split(key, 3)
    x = jax.random.normal(xk, (B, T, input_size), jnp.float32)
    params = init_params(pk, input_size, hidden_size, num_layers, output_size)

    fwd = jax.jit(lstm_forward)
    out = jax.block_until_ready(fwd(x, params))
    ref = jax.block_until_ready(reference_forward(x, params))

    assert out.shape == (B, output_size), out.shape
    # bf16 MXU operands (f32 accumulation) -> loosened tolerance vs the f32 reference.
    assert jnp.allclose(out, ref, atol=5e-2, rtol=5e-2), (
        f"mismatch: max abs err {jnp.max(jnp.abs(out - ref))}"
    )
    print("KERNEL_OK")
</pallas_src>

<mosaic_0001>
module attributes {stable_mosaic.version = 11 : i64} {
  func.func @fused_lstm_fc_kernel(%arg0: memref<16x16xf32, #tpu.memory_space<vmem>>, %arg1: memref<144x128xbf16, #tpu.memory_space<vmem>>, %arg2: memref<3x128xf32, #tpu.memory_space<vmem>>, %arg3: memref<2x4xf32, #tpu.memory_space<vmem>>, %arg4: memref<16x32xf32, #tpu.memory_space<vmem>>) attributes {dimension_semantics = [], scalar_prefetch = 0 : i64, scratch_operands = 1 : i64, tpu.core_type = #tpu.core_type<tc>} {
    %c0 = arith.constant 0 : index
    %c0_0 = arith.constant 0 : index
    %0 = vector.load %arg1[%c0, %c0_0] : memref<144x128xbf16, #tpu.memory_space<vmem>>, vector<16x128xbf16>
    %c16 = arith.constant 16 : index
    %c0_1 = arith.constant 0 : index
    %1 = vector.load %arg1[%c16, %c0_1] : memref<144x128xbf16, #tpu.memory_space<vmem>>, vector<32x128xbf16>
    %c0_2 = arith.constant 0 : index
    %c0_3 = arith.constant 0 : index
    %2 = vector.load %arg2[%c0_2, %c0_3] : memref<3x128xf32, #tpu.memory_space<vmem>>, vector<1x128xf32>
    %c0_4 = arith.constant 0 : index
    %c0_5 = arith.constant 0 : index
    %3 = vector.load %arg0[%c0_4, %c0_5] : memref<16x16xf32, #tpu.memory_space<vmem>>, vector<16x16xf32>
    %4 = arith.truncf %3 : vector<16x16xf32> to vector<16x16xbf16>
    %cst = arith.constant dense<0.000000e+00> : vector<16x128xf32>
    %5 = tpu.matmul %4, %0, %cst {dimension_numbers = #tpu.dot_dimension_numbers<[1], [0], [0], [1], [0, 0, 1, 1], [], []>} : vector<16x16xbf16>, vector<16x128xbf16>, vector<16x128xf32> -> vector<16x128xf32>
    %6 = vector.broadcast %2 : vector<1x128xf32> to vector<16x128xf32>
    %7 = arith.addf %5, %6 : vector<16x128xf32>
    %cst_6 = arith.constant 0.000000e+00 : f32
    %8 = vector.broadcast %cst_6 : f32 to vector<2x32xf32>
    %cst_7 = arith.constant 0.000000e+00 : f32
    %9 = vector.broadcast %cst_7 : f32 to vector<2x32xf32>
    %10 = vector.extract_strided_slice %7 {offsets = [0, 0], sizes = [2, 128], strides = [1, 1]} : vector<16x128xf32> to vector<2x128xf32>
    %11 = arith.truncf %8 : vector<2x32xf32> to vector<2x32xbf16>
    %cst_8 = arith.constant dense<0.000000e+00> : vector<2x128xf32>
    %12 = tpu.matmul %11, %1, %cst_8 {dimension_numbers = #tpu.dot_dimension_numbers<[1], [0], [0], [1], [0, 0, 1, 1], [], []>} : vector<2x32xbf16>, vector<32x128xbf16>, vector<2x128xf32> -> vector<2x128xf32>
    %13 = arith.addf %10, %12 : vector<2x128xf32>
    %14 = arith.negf %13 : vector<2x128xf32>
    %15 = math.exp %14 : vector<2x128xf32>
    %cst_9 = arith.constant 1.000000e+00 : f32
    %16 = vector.broadcast %cst_9 : f32 to vector<2x128xf32>
    %17 = arith.addf %16, %15 : vector<2x128xf32>
    %18 = arith.divf %16, %17 : vector<2x128xf32>
    %19 = vector.extract_strided_slice %18 {offsets = [0, 0], sizes = [2, 32], strides = [1, 1]} : vector<2x128xf32> to vector<2x32xf32>
    %20 = vector.extract_strided_slice %18 {offsets = [0, 32], sizes = [2, 32], strides = [1, 1]} : vector<2x128xf32> to vector<2x32xf32>
    %21 = vector.extract_strided_slice %18 {offsets = [0, 64], sizes = [2, 32], strides = [1, 1]} : vector<2x128xf32> to vector<2x32xf32>
    %cst_10 = arith.constant 2.000000e+00 : f32
    %22 = vector.broadcast %cst_10 : f32 to vector<2x32xf32>
    %23 = arith.mulf %22, %21 : vector<2x32xf32>
    %cst_11 = arith.constant 1.000000e+00 : f32
    %24 = vector.broadcast %cst_11 : f32 to vector<2x32xf32>
    %25 = arith.subf %23, %24 : vector<2x32xf32>
    %26 = vector.extract_strided_slice %18 {offsets = [0, 96], sizes = [2, 32], strides = [1, 1]} : vector<2x128xf32> to vector<2x32xf32>
    %27 = arith.mulf %20, %9 : vector<2x32xf32>
    %28 = arith.mulf %19, %25 : vector<2x32xf32>
    %29 = arith.addf %27, %28 : vector<2x32xf32>
    %cst_12 = arith.constant 2.000000e+00 : f32
    %30 = vector.broadcast %cst_12 : f32 to vector<2x32xf32>
    %31 = arith.mulf %30, %29 : vector<2x32xf32>
    %32 = arith.negf %31 : vector<2x32xf32>
    %33 = math.exp %32 : vector<2x32xf32>
    %cst_13 = arith.constant 1.000000e+00 : f32
    %34 = vector.broadcast %cst_13 : f32 to vector<2x32xf32>
    %35 = arith.addf %34, %33 : vector<2x32xf32>
    %36 = arith.divf %34, %35 : vector<2x32xf32>
    %cst_14 = arith.constant 2.000000e+00 : f32
    %37 = vector.broadcast %cst_14 : f32 to vector<2x32xf32>
    %38 = arith.mulf %37, %36 : vector<2x32xf32>
    %cst_15 = arith.constant 1.000000e+00 : f32
    %39 = vector.broadcast %cst_15 : f32 to vector<2x32xf32>
    %40 = arith.subf %38, %39 : vector<2x32xf32>
    %41 = arith.mulf %26, %40 : vector<2x32xf32>
    %c0_16 = arith.constant 0 : index
    %c0_17 = arith.constant 0 : index
    %42 = vector.load %arg4[%c0_16, %c0_17] : memref<16x32xf32, #tpu.memory_space<vmem>>, vector<2x32xf32>
    tpu.vector_store %arg4[%c0_16, %c0_17], %41 {strides = array<i32>} : memref<16x32xf32, #tpu.memory_space<vmem>>, vector<2x32xf32>,
    %43 = vector.extract_strided_slice %7 {offsets = [2, 0], sizes = [2, 128], strides = [1, 1]} : vector<16x128xf32> to vector<2x128xf32>
    %44 = arith.truncf %41 : vector<2x32xf32> to vector<2x32xbf16>
    %cst_18 = arith.constant dense<0.000000e+00> : vector<2x128xf32>
    %45 = tpu.matmul %44, %1, %cst_18 {dimension_numbers = #tpu.dot_dimension_numbers<[1], [0], [0], [1], [0, 0, 1, 1], [], []>} : vector<2x32xbf16>, vector<32x128xbf16>, vector<2x128xf32> -> vector<2x128xf32>
    %46 = arith.addf %43, %45 : vector<2x128xf32>
    %47 = arith.negf %46 : vector<2x128xf32>
    %48 = math.exp %47 : vector<2x128xf32>
    %cst_19 = arith.constant 1.000000e+00 : f32
    %49 = vector.broadcast %cst_19 : f32 to vector<2x128xf32>
    %50 = arith.addf %49, %48 : vector<2x128xf32>
    %51 = arith.divf %49, %50 : vector<2x128xf32>
    %52 = vector.extract_strided_slice %51 {offsets = [0, 0], sizes = [2, 32], strides = [1, 1]} : vector<2x128xf32> to vector<2x32xf32>
    %53 = vector.extract_strided_slice %51 {offsets = [0, 32], sizes = [2, 32], strides = [1, 1]} : vector<2x128xf32> to vector<2x32xf32>
    %54 = vector.extract_strided_slice %51 {offsets = [0, 64], sizes = [2, 32], strides = [1, 1]} : vector<2x128xf32> to vector<2x32xf32>
    %cst_20 = arith.constant 2.000000e+00 : f32
    %55 = vector.broadcast %cst_20 : f32 to vector<2x32xf32>
    %56 = arith.mulf %55, %54 : vector<2x32xf32>
    %cst_21 = arith.constant 1.000000e+00 : f32
    %57 = vector.broadcast %cst_21 : f32 to vector<2x32xf32>
    %58 = arith.subf %56, %57 : vector<2x32xf32>
    %59 = vector.extract_strided_slice %51 {offsets = [0, 96], sizes = [2, 32], strides = [1, 1]} : vector<2x128xf32> to vector<2x32xf32>
    %60 = arith.mulf %53, %29 : vector<2x32xf32>
    %61 = arith.mulf %52, %58 : vector<2x32xf32>
    %62 = arith.addf %60, %61 : vector<2x32xf32>
    %cst_22 = arith.constant 2.000000e+00 : f32
    %63 = vector.broadcast %cst_22 : f32 to vector<2x32xf32>
    %64 = arith.mulf %63, %62 : vector<2x32xf32>
    %65 = arith.negf %64 : vector<2x32xf32>
    %66 = math.exp %65 : vector<2x32xf32>
    %cst_23 = arith.constant 1.000000e+00 : f32
    %67 = vector.broadcast %cst_23 : f32 to vector<2x32xf32>
    %68 = arith.addf %67, %66 : vector<2x32xf32>
    %69 = arith.divf %67, %68 : vector<2x32xf32>
    %cst_24 = arith.constant 2.000000e+00 : f32
    %70 = vector.broadcast %cst_24 : f32 to vector<2x32xf32>
    %71 = arith.mulf %70, %69 : vector<2x32xf32>
    %cst_25 = arith.constant 1.000000e+00 : f32
    %72 = vector.broadcast %cst_25 : f32 to vector<2x32xf32>
    %73 = arith.subf %71, %72 : vector<2x32xf32>
    %74 = arith.mulf %59, %73 : vector<2x32xf32>
    %c2 = arith.constant 2 : index
    %c0_26 = arith.constant 0 : index
    %75 = vector.load %arg4[%c2, %c0_26] : memref<16x32xf32, #tpu.memory_space<vmem>>, vector<2x32xf32>
    tpu.vector_store %arg4[%c2, %c0_26], %74 {strides = array<i32>} : memref<16x32xf32, #tpu.memory_space<vmem>>, vector<2x32xf32>,
    %76 = vector.extract_strided_slice %7 {offsets = [4, 0], sizes = [2, 128], strides = [1, 1]} : vector<16x128xf32> to vector<2x128xf32>
    %77 = arith.truncf %74 : vector<2x32xf32> to vector<2x32xbf16>
    %cst_27 = arith.constant dense<0.000000e+00> : vector<2x128xf32>
    %78 = tpu.matmul %77, %1, %cst_27 {dimension_numbers = #tpu.dot_dimension_numbers<[1], [0], [0], [1], [0, 0, 1, 1], [], []>} : vector<2x32xbf16>, vector<32x128xbf16>, vector<2x128xf32> -> vector<2x128xf32>
    %79 = arith.addf %76, %78 : vector<2x128xf32>
    %80 = arith.negf %79 : vector<2x128xf32>
    %81 = math.exp %80 : vector<2x128xf32>
    %cst_28 = arith.constant 1.000000e+00 : f32
    %82 = vector.broadcast %cst_28 : f32 to vector<2x128xf32>
    %83 = arith.addf %82, %81 : vector<2x128xf32>
    %84 = arith.divf %82, %83 : vector<2x128xf32>
    %85 = vector.extract_strided_slice %84 {offsets = [0, 0], sizes = [2, 32], strides = [1, 1]} : vector<2x128xf32> to vector<2x32xf32>
    %86 = vector.extract_strided_slice %84 {offsets = [0, 32], sizes = [2, 32], strides = [1, 1]} : vector<2x128xf32> to vector<2x32xf32>
    %87 = vector.extract_strided_slice %84 {offsets = [0, 64], sizes = [2, 32], strides = [1, 1]} : vector<2x128xf32> to vector<2x32xf32>
    %cst_29 = arith.constant 2.000000e+00 : f32
    %88 = vector.broadcast %cst_29 : f32 to vector<2x32xf32>
    %89 = arith.mulf %88, %87 : vector<2x32xf32>
    %cst_30 = arith.constant 1.000000e+00 : f32
    %90 = vector.broadcast %cst_30 : f32 to vector<2x32xf32>
    %91 = arith.subf %89, %90 : vector<2x32xf32>
    %92 = vector.extract_strided_slice %84 {offsets = [0, 96], sizes = [2, 32], strides = [1, 1]} : vector<2x128xf32> to vector<2x32xf32>
    %93 = arith.mulf %86, %62 : vector<2x32xf32>
    %94 = arith.mulf %85, %91 : vector<2x32xf32>
    %95 = arith.addf %93, %94 : vector<2x32xf32>
    %cst_31 = arith.constant 2.000000e+00 : f32
    %96 = vector.broadcast %cst_31 : f32 to vector<2x32xf32>
    %97 = arith.mulf %96, %95 : vector<2x32xf32>
    %98 = arith.negf %97 : vector<2x32xf32>
    %99 = math.exp %98 : vector<2x32xf32>
    %cst_32 = arith.constant 1.000000e+00 : f32
    %100 = vector.broadcast %cst_32 : f32 to vector<2x32xf32>
    %101 = arith.addf %100, %99 : vector<2x32xf32>
    %102 = arith.divf %100, %101 : vector<2x32xf32>
    %cst_33 = arith.constant 2.000000e+00 : f32
    %103 = vector.broadcast %cst_33 : f32 to vector<2x32xf32>
    %104 = arith.mulf %103, %102 : vector<2x32xf32>
    %cst_34 = arith.constant 1.000000e+00 : f32
    %105 = vector.broadcast %cst_34 : f32 to vector<2x32xf32>
    %106 = arith.subf %104, %105 : vector<2x32xf32>
    %107 = arith.mulf %92, %106 : vector<2x32xf32>
    %c4 = arith.constant 4 : index
    %c0_35 = arith.constant 0 : index
    %108 = vector.load %arg4[%c4, %c0_35] : memref<16x32xf32, #tpu.memory_space<vmem>>, vector<2x32xf32>
    tpu.vector_store %arg4[%c4, %c0_35], %107 {strides = array<i32>} : memref<16x32xf32, #tpu.memory_space<vmem>>, vector<2x32xf32>,
    %109 = vector.extract_strided_slice %7 {offsets = [6, 0], sizes = [2, 128], strides = [1, 1]} : vector<16x128xf32> to vector<2x128xf32>
    %110 = arith.truncf %107 : vector<2x32xf32> to vector<2x32xbf16>
    %cst_36 = arith.constant dense<0.000000e+00> : vector<2x128xf32>
    %111 = tpu.matmul %110, %1, %cst_36 {dimension_numbers = #tpu.dot_dimension_numbers<[1], [0], [0], [1], [0, 0, 1, 1], [], []>} : vector<2x32xbf16>, vector<32x128xbf16>, vector<2x128xf32> -> vector<2x128xf32>
    %112 = arith.addf %109, %111 : vector<2x128xf32>
    %113 = arith.negf %112 : vector<2x128xf32>
    %114 = math.exp %113 : vector<2x128xf32>
    %cst_37 = arith.constant 1.000000e+00 : f32
    %115 = vector.broadcast %cst_37 : f32 to vector<2x128xf32>
    %116 = arith.addf %115, %114 : vector<2x128xf32>
    %117 = arith.divf %115, %116 : vector<2x128xf32>
    %118 = vector.extract_strided_slice %117 {offsets = [0, 0], sizes = [2, 32], strides = [1, 1]} : vector<2x128xf32> to vector<2x32xf32>
    %119 = vector.extract_strided_slice %117 {offsets = [0, 32], sizes = [2, 32], strides = [1, 1]} : vector<2x128xf32> to vector<2x32xf32>
    %120 = vector.extract_strided_slice %117 {offsets = [0, 64], sizes = [2, 32], strides = [1, 1]} : vector<2x128xf32> to vector<2x32xf32>
    %cst_38 = arith.constant 2.000000e+00 : f32
    %121 = vector.broadcast %cst_38 : f32 to vector<2x32xf32>
    %122 = arith.mulf %121, %120 : vector<2x32xf32>
    %cst_39 = arith.constant 1.000000e+00 : f32
    %123 = vector.broadcast %cst_39 : f32 to vector<2x32xf32>
    %124 = arith.subf %122, %123 : vector<2x32xf32>
    %125 = vector.extract_strided_slice %117 {offsets = [0, 96], sizes = [2, 32], strides = [1, 1]} : vector<2x128xf32> to vector<2x32xf32>
    %126 = arith.mulf %119, %95 : vector<2x32xf32>
    %127 = arith.mulf %118, %124 : vector<2x32xf32>
    %128 = arith.addf %126, %127 : vector<2x32xf32>
    %cst_40 = arith.constant 2.000000e+00 : f32
    %129 = vector.broadcast %cst_40 : f32 to vector<2x32xf32>
    %130 = arith.mulf %129, %128 : vector<2x32xf32>
    %131 = arith.negf %130 : vector<2x32xf32>
    %132 = math.exp %131 : vector<2x32xf32>
    %cst_41 = arith.constant 1.000000e+00 : f32
    %133 = vector.broadcast %cst_41 : f32 to vector<2x32xf32>
    %134 = arith.addf %133, %132 : vector<2x32xf32>
    %135 = arith.divf %133, %134 : vector<2x32xf32>
    %cst_42 = arith.constant 2.000000e+00 : f32
    %136 = vector.broadcast %cst_42 : f32 to vector<2x32xf32>
    %137 = arith.mulf %136, %135 : vector<2x32xf32>
    %cst_43 = arith.constant 1.000000e+00 : f32
    %138 = vector.broadcast %cst_43 : f32 to vector<2x32xf32>
    %139 = arith.subf %137, %138 : vector<2x32xf32>
    %140 = arith.mulf %125, %139 : vector<2x32xf32>
    %c6 = arith.constant 6 : index
    %c0_44 = arith.constant 0 : index
    %141 = vector.load %arg4[%c6, %c0_44] : memref<16x32xf32, #tpu.memory_space<vmem>>, vector<2x32xf32>
    tpu.vector_store %arg4[%c6, %c0_44], %140 {strides = array<i32>} : memref<16x32xf32, #tpu.memory_space<vmem>>, vector<2x32xf32>,
    %142 = vector.extract_strided_slice %7 {offsets = [8, 0], sizes = [2, 128], strides = [1, 1]} : vector<16x128xf32> to vector<2x128xf32>
    %143 = arith.truncf %140 : vector<2x32xf32> to vector<2x32xbf16>
    %cst_45 = arith.constant dense<0.000000e+00> : vector<2x128xf32>
    %144 = tpu.matmul %143, %1, %cst_45 {dimension_numbers = #tpu.dot_dimension_numbers<[1], [0], [0], [1], [0, 0, 1, 1], [], []>} : vector<2x32xbf16>, vector<32x128xbf16>, vector<2x128xf32> -> vector<2x128xf32>
    %145 = arith.addf %142, %144 : vector<2x128xf32>
    %146 = arith.negf %145 : vector<2x128xf32>
    %147 = math.exp %146 : vector<2x128xf32>
    %cst_46 = arith.constant 1.000000e+00 : f32
    %148 = vector.broadcast %cst_46 : f32 to vector<2x128xf32>
    %149 = arith.addf %148, %147 : vector<2x128xf32>
    %150 = arith.divf %148, %149 : vector<2x128xf32>
    %151 = vector.extract_strided_slice %150 {offsets = [0, 0], sizes = [2, 32], strides = [1, 1]} : vector<2x128xf32> to vector<2x32xf32>
    %152 = vector.extract_strided_slice %150 {offsets = [0, 32], sizes = [2, 32], strides = [1, 1]} : vector<2x128xf32> to vector<2x32xf32>
    %153 = vector.extract_strided_slice %150 {offsets = [0, 64], sizes = [2, 32], strides = [1, 1]} : vector<2x128xf32> to vector<2x32xf32>
    %cst_47 = arith.constant 2.000000e+00 : f32
    %154 = vector.broadcast %cst_47 : f32 to vector<2x32xf32>
    %155 = arith.mulf %154, %153 : vector<2x32xf32>
    %cst_48 = arith.constant 1.000000e+00 : f32
    %156 = vector.broadcast %cst_48 : f32 to vector<2x32xf32>
    %157 = arith.subf %155, %156 : vector<2x32xf32>
    %158 = vector.extract_strided_slice %150 {offsets = [0, 96], sizes = [2, 32], strides = [1, 1]} : vector<2x128xf32> to vector<2x32xf32>
    %159 = arith.mulf %152, %128 : vector<2x32xf32>
    %160 = arith.mulf %151, %157 : vector<2x32xf32>
    %161 = arith.addf %159, %160 : vector<2x32xf32>
    %cst_49 = arith.constant 2.000000e+00 : f32
    %162 = vector.broadcast %cst_49 : f32 to vector<2x32xf32>
    %163 = arith.mulf %162, %161 : vector<2x32xf32>
    %164 = arith.negf %163 : vector<2x32xf32>
    %165 = math.exp %164 : vector<2x32xf32>
    %cst_50 = arith.constant 1.000000e+00 : f32
    %166 = vector.broadcast %cst_50 : f32 to vector<2x32xf32>
    %167 = arith.addf %166, %165 : vector<2x32xf32>
    %168 = arith.divf %166, %167 : vector<2x32xf32>
    %cst_51 = arith.constant 2.000000e+00 : f32
    %169 = vector.broadcast %cst_51 : f32 to vector<2x32xf32>
    %170 = arith.mulf %169, %168 : vector<2x32xf32>
    %cst_52 = arith.constant 1.000000e+00 : f32
    %171 = vector.broadcast %cst_52 : f32 to vector<2x32xf32>
    %172 = arith.subf %170, %171 : vector<2x32xf32>
    %173 = arith.mulf %158, %172 : vector<2x32xf32>
    %c8 = arith.constant 8 : index
    %c0_53 = arith.constant 0 : index
    %174 = vector.load %arg4[%c8, %c0_53] : memref<16x32xf32, #tpu.memory_space<vmem>>, vector<2x32xf32>
    tpu.vector_store %arg4[%c8, %c0_53], %173 {strides = array<i32>} : memref<16x32xf32, #tpu.memory_space<vmem>>, vector<2x32xf32>,
    %175 = vector.extract_strided_slice %7 {offsets = [10, 0], sizes = [2, 128], strides = [1, 1]} : vector<16x128xf32> to vector<2x128xf32>
    %176 = arith.truncf %173 : vector<2x32xf32> to vector<2x32xbf16>
    %cst_54 = arith.constant dense<0.000000e+00> : vector<2x128xf32>
    %177 = tpu.matmul %176, %1, %cst_54 {dimension_numbers = #tpu.dot_dimension_numbers<[1], [0], [0], [1], [0, 0, 1, 1], [], []>} : vector<2x32xbf16>, vector<32x128xbf16>, vector<2x128xf32> -> vector<2x128xf32>
    %178 = arith.addf %175, %177 : vector<2x128xf32>
    %179 = arith.negf %178 : vector<2x128xf32>
    %180 = math.exp %179 : vector<2x128xf32>
    %cst_55 = arith.constant 1.000000e+00 : f32
    %181 = vector.broadcast %cst_55 : f32 to vector<2x128xf32>
    %182 = arith.addf %181, %180 : vector<2x128xf32>
    %183 = arith.divf %181, %182 : vector<2x128xf32>
    %184 = vector.extract_strided_slice %183 {offsets = [0, 0], sizes = [2, 32], strides = [1, 1]} : vector<2x128xf32> to vector<2x32xf32>
    %185 = vector.extract_strided_slice %183 {offsets = [0, 32], sizes = [2, 32], strides = [1, 1]} : vector<2x128xf32> to vector<2x32xf32>
    %186 = vector.extract_strided_slice %183 {offsets = [0, 64], sizes = [2, 32], strides = [1, 1]} : vector<2x128xf32> to vector<2x32xf32>
    %cst_56 = arith.constant 2.000000e+00 : f32
    %187 = vector.broadcast %cst_56 : f32 to vector<2x32xf32>
    %188 = arith.mulf %187, %186 : vector<2x32xf32>
    %cst_57 = arith.constant 1.000000e+00 : f32
    %189 = vector.broadcast %cst_57 : f32 to vector<2x32xf32>
    %190 = arith.subf %188, %189 : vector<2x32xf32>
    %191 = vector.extract_strided_slice %183 {offsets = [0, 96], sizes = [2, 32], strides = [1, 1]} : vector<2x128xf32> to vector<2x32xf32>
    %192 = arith.mulf %185, %161 : vector<2x32xf32>
    %193 = arith.mulf %184, %190 : vector<2x32xf32>
    %194 = arith.addf %192, %193 : vector<2x32xf32>
    %cst_58 = arith.constant 2.000000e+00 : f32
    %195 = vector.broadcast %cst_58 : f32 to vector<2x32xf32>
    %196 = arith.mulf %195, %194 : vector<2x32xf32>
    %197 = arith.negf %196 : vector<2x32xf32>
    %198 = math.exp %197 : vector<2x32xf32>
    %cst_59 = arith.constant 1.000000e+00 : f32
    %199 = vector.broadcast %cst_59 : f32 to vector<2x32xf32>
    %200 = arith.addf %199, %198 : vector<2x32xf32>
    %201 = arith.divf %199, %200 : vector<2x32xf32>
    %cst_60 = arith.constant 2.000000e+00 : f32
    %202 = vector.broadcast %cst_60 : f32 to vector<2x32xf32>
    %203 = arith.mulf %202, %201 : vector<2x32xf32>
    %cst_61 = arith.constant 1.000000e+00 : f32
    %204 = vector.broadcast %cst_61 : f32 to vector<2x32xf32>
    %205 = arith.subf %203, %204 : vector<2x32xf32>
    %206 = arith.mulf %191, %205 : vector<2x32xf32>
    %c10 = arith.constant 10 : index
    %c0_62 = arith.constant 0 : index
    %207 = vector.load %arg4[%c10, %c0_62] : memref<16x32xf32, #tpu.memory_space<vmem>>, vector<2x32xf32>
    tpu.vector_store %arg4[%c10, %c0_62], %206 {strides = array<i32>} : memref<16x32xf32, #tpu.memory_space<vmem>>, vector<2x32xf32>,
    %208 = vector.extract_strided_slice %7 {offsets = [12, 0], sizes = [2, 128], strides = [1, 1]} : vector<16x128xf32> to vector<2x128xf32>
    %209 = arith.truncf %206 : vector<2x32xf32> to vector<2x32xbf16>
    %cst_63 = arith.constant dense<0.000000e+00> : vector<2x128xf32>
    %210 = tpu.matmul %209, %1, %cst_63 {dimension_numbers = #tpu.dot_dimension_numbers<[1], [0], [0], [1], [0, 0, 1, 1], [], []>} : vector<2x32xbf16>, vector<32x128xbf16>, vector<2x128xf32> -> vector<2x128xf32>
    %211 = arith.addf %208, %210 : vector<2x128xf32>
    %212 = arith.negf %211 : vector<2x128xf32>
    %213 = math.exp %212 : vector<2x128xf32>
    %cst_64 = arith.constant 1.000000e+00 : f32
    %214 = vector.broadcast %cst_64 : f32 to vector<2x128xf32>
    %215 = arith.addf %214, %213 : vector<2x128xf32>
    %216 = arith.divf %214, %215 : vector<2x128xf32>
    %217 = vector.extract_strided_slice %216 {offsets = [0, 0], sizes = [2, 32], strides = [1, 1]} : vector<2x128xf32> to vector<2x32xf32>
    %218 = vector.extract_strided_slice %216 {offsets = [0, 32], sizes = [2, 32], strides = [1, 1]} : vector<2x128xf32> to vector<2x32xf32>
    %219 = vector.extract_strided_slice %216 {offsets = [0, 64], sizes = [2, 32], strides = [1, 1]} : vector<2x128xf32> to vector<2x32xf32>
    %cst_65 = arith.constant 2.000000e+00 : f32
    %220 = vector.broadcast %cst_65 : f32 to vector<2x32xf32>
    %221 = arith.mulf %220, %219 : vector<2x32xf32>
    %cst_66 = arith.constant 1.000000e+00 : f32
    %222 = vector.broadcast %cst_66 : f32 to vector<2x32xf32>
    %223 = arith.subf %221, %222 : vector<2x32xf32>
    %224 = vector.extract_strided_slice %216 {offsets = [0, 96], sizes = [2, 32], strides = [1, 1]} : vector<2x128xf32> to vector<2x32xf32>
    %225 = arith.mulf %218, %194 : vector<2x32xf32>
    %226 = arith.mulf %217, %223 : vector<2x32xf32>
    %227 = arith.addf %225, %226 : vector<2x32xf32>
    %cst_67 = arith.constant 2.000000e+00 : f32
    %228 = vector.broadcast %cst_67 : f32 to vector<2x32xf32>
    %229 = arith.mulf %228, %227 : vector<2x32xf32>
    %230 = arith.negf %229 : vector<2x32xf32>
    %231 = math.exp %230 : vector<2x32xf32>
    %cst_68 = arith.constant 1.000000e+00 : f32
    %232 = vector.broadcast %cst_68 : f32 to vector<2x32xf32>
    %233 = arith.addf %232, %231 : vector<2x32xf32>
    %234 = arith.divf %232, %233 : vector<2x32xf32>
    %cst_69 = arith.constant 2.000000e+00 : f32
    %235 = vector.broadcast %cst_69 : f32 to vector<2x32xf32>
    %236 = arith.mulf %235, %234 : vector<2x32xf32>
    %cst_70 = arith.constant 1.000000e+00 : f32
    %237 = vector.broadcast %cst_70 : f32 to vector<2x32xf32>
    %238 = arith.subf %236, %237 : vector<2x32xf32>
    %239 = arith.mulf %224, %238 : vector<2x32xf32>
    %c12 = arith.constant 12 : index
    %c0_71 = arith.constant 0 : index
    %240 = vector.load %arg4[%c12, %c0_71] : memref<16x32xf32, #tpu.memory_space<vmem>>, vector<2x32xf32>
    tpu.vector_store %arg4[%c12, %c0_71], %239 {strides = array<i32>} : memref<16x32xf32, #tpu.memory_space<vmem>>, vector<2x32xf32>,
    %241 = vector.extract_strided_slice %7 {offsets = [14, 0], sizes = [2, 128], strides = [1, 1]} : vector<16x128xf32> to vector<2x128xf32>
    %242 = arith.truncf %239 : vector<2x32xf32> to vector<2x32xbf16>
    %cst_72 = arith.constant dense<0.000000e+00> : vector<2x128xf32>
    %243 = tpu.matmul %242, %1, %cst_72 {dimension_numbers = #tpu.dot_dimension_numbers<[1], [0], [0], [1], [0, 0, 1, 1], [], []>} : vector<2x32xbf16>, vector<32x128xbf16>, vector<2x128xf32> -> vector<2x128xf32>
    %244 = arith.addf %241, %243 : vector<2x128xf32>
    %245 = arith.negf %244 : vector<2x128xf32>
    %246 = math.exp %245 : vector<2x128xf32>
    %cst_73 = arith.constant 1.000000e+00 : f32
    %247 = vector.broadcast %cst_73 : f32 to vector<2x128xf32>
    %248 = arith.addf %247, %246 : vector<2x128xf32>
    %249 = arith.divf %247, %248 : vector<2x128xf32>
    %250 = vector.extract_strided_slice %249 {offsets = [0, 0], sizes = [2, 32], strides = [1, 1]} : vector<2x128xf32> to vector<2x32xf32>
    %251 = vector.extract_strided_slice %249 {offsets = [0, 32], sizes = [2, 32], strides = [1, 1]} : vector<2x128xf32> to vector<2x32xf32>
    %252 = vector.extract_strided_slice %249 {offsets = [0, 64], sizes = [2, 32], strides = [1, 1]} : vector<2x128xf32> to vector<2x32xf32>
    %cst_74 = arith.constant 2.000000e+00 : f32
    %253 = vector.broadcast %cst_74 : f32 to vector<2x32xf32>
    %254 = arith.mulf %253, %252 : vector<2x32xf32>
    %cst_75 = arith.constant 1.000000e+00 : f32
    %255 = vector.broadcast %cst_75 : f32 to vector<2x32xf32>
    %256 = arith.subf %254, %255 : vector<2x32xf32>
    %257 = vector.extract_strided_slice %249 {offsets = [0, 96], sizes = [2, 32], strides = [1, 1]} : vector<2x128xf32> to vector<2x32xf32>
    %258 = arith.mulf %251, %227 : vector<2x32xf32>
    %259 = arith.mulf %250, %256 : vector<2x32xf32>
    %260 = arith.addf %258, %259 : vector<2x32xf32>
    %cst_76 = arith.constant 2.000000e+00 : f32
    %261 = vector.broadcast %cst_76 : f32 to vector<2x32xf32>
    %262 = arith.mulf %261, %260 : vector<2x32xf32>
    %263 = arith.negf %262 : vector<2x32xf32>
    %264 = math.exp %263 : vector<2x32xf32>
    %cst_77 = arith.constant 1.000000e+00 : f32
    %265 = vector.broadcast %cst_77 : f32 to vector<2x32xf32>
    %266 = arith.addf %265, %264 : vector<2x32xf32>
    %267 = arith.divf %265, %266 : vector<2x32xf32>
    %cst_78 = arith.constant 2.000000e+00 : f32
    %268 = vector.broadcast %cst_78 : f32 to vector<2x32xf32>
    %269 = arith.mulf %268, %267 : vector<2x32xf32>
    %cst_79 = arith.constant 1.000000e+00 : f32
    %270 = vector.broadcast %cst_79 : f32 to vector<2x32xf32>
    %271 = arith.subf %269, %270 : vector<2x32xf32>
    %272 = arith.mulf %257, %271 : vector<2x32xf32>
    %c14 = arith.constant 14 : index
    %c0_80 = arith.constant 0 : index
    %273 = vector.load %arg4[%c14, %c0_80] : memref<16x32xf32, #tpu.memory_space<vmem>>, vector<2x32xf32>
    tpu.vector_store %arg4[%c14, %c0_80], %272 {strides = array<i32>} : memref<16x32xf32, #tpu.memory_space<vmem>>, vector<2x32xf32>,
    %c48 = arith.constant 48 : index
    %c0_81 = arith.constant 0 : index
    %274 = vector.load %arg1[%c48, %c0_81] : memref<144x128xbf16, #tpu.memory_space<vmem>>, vector<32x128xbf16>
    %c80 = arith.constant 80 : index
    %c0_82 = arith.constant 0 : index
    %275 = vector.load %arg1[%c80, %c0_82] : memref<144x128xbf16, #tpu.memory_space<vmem>>, vector<32x128xbf16>
    %c1 = arith.constant 1 : index
    %c0_83 = arith.constant 0 : index
    %276 = vector.load %arg2[%c1, %c0_83] : memref<3x128xf32, #tpu.memory_space<vmem>>, vector<1x128xf32>
    %c0_84 = arith.constant 0 : index
    %c0_85 = arith.constant 0 : index
    %277 = vector.load %arg4[%c0_84, %c0_85] : memref<16x32xf32, #tpu.memory_space<vmem>>, vector<16x32xf32>
    %278 = arith.truncf %277 : vector<16x32xf32> to vector<16x32xbf16>
    %cst_86 = arith.constant dense<0.000000e+00> : vector<16x128xf32>
    %279 = tpu.matmul %278, %274, %cst_86 {dimension_numbers = #tpu.dot_dimension_numbers<[1], [0], [0], [1], [0, 0, 1, 1], [], []>} : vector<16x32xbf16>, vector<32x128xbf16>, vector<16x128xf32> -> vector<16x128xf32>
    %280 = vector.broadcast %276 : vector<1x128xf32> to vector<16x128xf32>
    %281 = arith.addf %279, %280 : vector<16x128xf32>
    %cst_87 = arith.constant 0.000000e+00 : f32
    %282 = vector.broadcast %cst_87 : f32 to vector<2x32xf32>
    %cst_88 = arith.constant 0.000000e+00 : f32
    %283 = vector.broadcast %cst_88 : f32 to vector<2x32xf32>
    %284 = vector.extract_strided_slice %281 {offsets = [0, 0], sizes = [2, 128], strides = [1, 1]} : vector<16x128xf32> to vector<2x128xf32>
    %285 = arith.truncf %282 : vector<2x32xf32> to vector<2x32xbf16>
    %cst_89 = arith.constant dense<0.000000e+00> : vector<2x128xf32>
    %286 = tpu.matmul %285, %275, %cst_89 {dimension_numbers = #tpu.dot_dimension_numbers<[1], [0], [0], [1], [0, 0, 1, 1], [], []>} : vector<2x32xbf16>, vector<32x128xbf16>, vector<2x128xf32> -> vector<2x128xf32>
    %287 = arith.addf %284, %286 : vector<2x128xf32>
    %288 = arith.negf %287 : vector<2x128xf32>
    %289 = math.exp %288 : vector<2x128xf32>
    %cst_90 = arith.constant 1.000000e+00 : f32
    %290 = vector.broadcast %cst_90 : f32 to vector<2x128xf32>
    %291 = arith.addf %290, %289 : vector<2x128xf32>
    %292 = arith.divf %290, %291 : vector<2x128xf32>
    %293 = vector.extract_strided_slice %292 {offsets = [0, 0], sizes = [2, 32], strides = [1, 1]} : vector<2x128xf32> to vector<2x32xf32>
    %294 = vector.extract_strided_slice %292 {offsets = [0, 32], sizes = [2, 32], strides = [1, 1]} : vector<2x128xf32> to vector<2x32xf32>
    %295 = vector.extract_strided_slice %292 {offsets = [0, 64], sizes = [2, 32], strides = [1, 1]} : vector<2x128xf32> to vector<2x32xf32>
    %cst_91 = arith.constant 2.000000e+00 : f32
    %296 = vector.broadcast %cst_91 : f32 to vector<2x32xf32>
    %297 = arith.mulf %296, %295 : vector<2x32xf32>
    %cst_92 = arith.constant 1.000000e+00 : f32
    %298 = vector.broadcast %cst_92 : f32 to vector<2x32xf32>
    %299 = arith.subf %297, %298 : vector<2x32xf32>
    %300 = vector.extract_strided_slice %292 {offsets = [0, 96], sizes = [2, 32], strides = [1, 1]} : vector<2x128xf32> to vector<2x32xf32>
    %301 = arith.mulf %294, %283 : vector<2x32xf32>
    %302 = arith.mulf %293, %299 : vector<2x32xf32>
    %303 = arith.addf %301, %302 : vector<2x32xf32>
    %cst_93 = arith.constant 2.000000e+00 : f32
    %304 = vector.broadcast %cst_93 : f32 to vector<2x32xf32>
    %305 = arith.mulf %304, %303 : vector<2x32xf32>
    %306 = arith.negf %305 : vector<2x32xf32>
    %307 = math.exp %306 : vector<2x32xf32>
    %cst_94 = arith.constant 1.000000e+00 : f32
    %308 = vector.broadcast %cst_94 : f32 to vector<2x32xf32>
    %309 = arith.addf %308, %307 : vector<2x32xf32>
    %310 = arith.divf %308, %309 : vector<2x32xf32>
    %cst_95 = arith.constant 2.000000e+00 : f32
    %311 = vector.broadcast %cst_95 : f32 to vector<2x32xf32>
    %312 = arith.mulf %311, %310 : vector<2x32xf32>
    %cst_96 = arith.constant 1.000000e+00 : f32
    %313 = vector.broadcast %cst_96 : f32 to vector<2x32xf32>
    %314 = arith.subf %312, %313 : vector<2x32xf32>
    %315 = arith.mulf %300, %314 : vector<2x32xf32>
    %316 = vector.extract_strided_slice %281 {offsets = [2, 0], sizes = [2, 128], strides = [1, 1]} : vector<16x128xf32> to vector<2x128xf32>
    %317 = arith.truncf %315 : vector<2x32xf32> to vector<2x32xbf16>
    %cst_97 = arith.constant dense<0.000000e+00> : vector<2x128xf32>
    %318 = tpu.matmul %317, %275, %cst_97 {dimension_numbers = #tpu.dot_dimension_numbers<[1], [0], [0], [1], [0, 0, 1, 1], [], []>} : vector<2x32xbf16>, vector<32x128xbf16>, vector<2x128xf32> -> vector<2x128xf32>
    %319 = arith.addf %316, %318 : vector<2x128xf32>
    %320 = arith.negf %319 : vector<2x128xf32>
    %321 = math.exp %320 : vector<2x128xf32>
    %cst_98 = arith.constant 1.000000e+00 : f32
    %322 = vector.broadcast %cst_98 : f32 to vector<2x128xf32>
    %323 = arith.addf %322, %321 : vector<2x128xf32>
    %324 = arith.divf %322, %323 : vector<2x128xf32>
    %325 = vector.extract_strided_slice %324 {offsets = [0, 0], sizes = [2, 32], strides = [1, 1]} : vector<2x128xf32> to vector<2x32xf32>
    %326 = vector.extract_strided_slice %324 {offsets = [0, 32], sizes = [2, 32], strides = [1, 1]} : vector<2x128xf32> to vector<2x32xf32>
    %327 = vector.extract_strided_slice %324 {offsets = [0, 64], sizes = [2, 32], strides = [1, 1]} : vector<2x128xf32> to vector<2x32xf32>
    %cst_99 = arith.constant 2.000000e+00 : f32
    %328 = vector.broadcast %cst_99 : f32 to vector<2x32xf32>
    %329 = arith.mulf %328, %327 : vector<2x32xf32>
    %cst_100 = arith.constant 1.000000e+00 : f32
    %330 = vector.broadcast %cst_100 : f32 to vector<2x32xf32>
    %331 = arith.subf %329, %330 : vector<2x32xf32>
    %332 = vector.extract_strided_slice %324 {offsets = [0, 96], sizes = [2, 32], strides = [1, 1]} : vector<2x128xf32> to vector<2x32xf32>
    %333 = arith.mulf %326, %303 : vector<2x32xf32>
    %334 = arith.mulf %325, %331 : vector<2x32xf32>
    %335 = arith.addf %333, %334 : vector<2x32xf32>
    %cst_101 = arith.constant 2.000000e+00 : f32
    %336 = vector.broadcast %cst_101 : f32 to vector<2x32xf32>
    %337 = arith.mulf %336, %335 : vector<2x32xf32>
    %338 = arith.negf %337 : vector<2x32xf32>
    %339 = math.exp %338 : vector<2x32xf32>
    %cst_102 = arith.constant 1.000000e+00 : f32
    %340 = vector.broadcast %cst_102 : f32 to vector<2x32xf32>
    %341 = arith.addf %340, %339 : vector<2x32xf32>
    %342 = arith.divf %340, %341 : vector<2x32xf32>
    %cst_103 = arith.constant 2.000000e+00 : f32
    %343 = vector.broadcast %cst_103 : f32 to vector<2x32xf32>
    %344 = arith.mulf %343, %342 : vector<2x32xf32>
    %cst_104 = arith.constant 1.000000e+00 : f32
    %345 = vector.broadcast %cst_104 : f32 to vector<2x32xf32>
    %346 = arith.subf %344, %345 : vector<2x32xf32>
    %347 = arith.mulf %332, %346 : vector<2x32xf32>
    %348 = vector.extract_strided_slice %281 {offsets = [4, 0], sizes = [2, 128], strides = [1, 1]} : vector<16x128xf32> to vector<2x128xf32>
    %349 = arith.truncf %347 : vector<2x32xf32> to vector<2x32xbf16>
    %cst_105 = arith.constant dense<0.000000e+00> : vector<2x128xf32>
    %350 = tpu.matmul %349, %275, %cst_105 {dimension_numbers = #tpu.dot_dimension_numbers<[1], [0], [0], [1], [0, 0, 1, 1], [], []>} : vector<2x32xbf16>, vector<32x128xbf16>, vector<2x128xf32> -> vector<2x128xf32>
    %351 = arith.addf %348, %350 : vector<2x128xf32>
    %352 = arith.negf %351 : vector<2x128xf32>
    %353 = math.exp %352 : vector<2x128xf32>
    %cst_106 = arith.constant 1.000000e+00 : f32
    %354 = vector.broadcast %cst_106 : f32 to vector<2x128xf32>
    %355 = arith.addf %354, %353 : vector<2x128xf32>
    %356 = arith.divf %354, %355 : vector<2x128xf32>
    %357 = vector.extract_strided_slice %356 {offsets = [0, 0], sizes = [2, 32], strides = [1, 1]} : vector<2x128xf32> to vector<2x32xf32>
    %358 = vector.extract_strided_slice %356 {offsets = [0, 32], sizes = [2, 32], strides = [1, 1]} : vector<2x128xf32> to vector<2x32xf32>
    %359 = vector.extract_strided_slice %356 {offsets = [0, 64], sizes = [2, 32], strides = [1, 1]} : vector<2x128xf32> to vector<2x32xf32>
    %cst_107 = arith.constant 2.000000e+00 : f32
    %360 = vector.broadcast %cst_107 : f32 to vector<2x32xf32>
    %361 = arith.mulf %360, %359 : vector<2x32xf32>
    %cst_108 = arith.constant 1.000000e+00 : f32
    %362 = vector.broadcast %cst_108 : f32 to vector<2x32xf32>
    %363 = arith.subf %361, %362 : vector<2x32xf32>
    %364 = vector.extract_strided_slice %356 {offsets = [0, 96], sizes = [2, 32], strides = [1, 1]} : vector<2x128xf32> to vector<2x32xf32>
    %365 = arith.mulf %358, %335 : vector<2x32xf32>
    %366 = arith.mulf %357, %363 : vector<2x32xf32>
    %367 = arith.addf %365, %366 : vector<2x32xf32>
    %cst_109 = arith.constant 2.000000e+00 : f32
    %368 = vector.broadcast %cst_109 : f32 to vector<2x32xf32>
    %369 = arith.mulf %368, %367 : vector<2x32xf32>
    %370 = arith.negf %369 : vector<2x32xf32>
    %371 = math.exp %370 : vector<2x32xf32>
    %cst_110 = arith.constant 1.000000e+00 : f32
    %372 = vector.broadcast %cst_110 : f32 to vector<2x32xf32>
    %373 = arith.addf %372, %371 : vector<2x32xf32>
    %374 = arith.divf %372, %373 : vector<2x32xf32>
    %cst_111 = arith.constant 2.000000e+00 : f32
    %375 = vector.broadcast %cst_111 : f32 to vector<2x32xf32>
    %376 = arith.mulf %375, %374 : vector<2x32xf32>
    %cst_112 = arith.constant 1.000000e+00 : f32
    %377 = vector.broadcast %cst_112 : f32 to vector<2x32xf32>
    %378 = arith.subf %376, %377 : vector<2x32xf32>
    %379 = arith.mulf %364, %378 : vector<2x32xf32>
    %380 = vector.extract_strided_slice %281 {offsets = [6, 0], sizes = [2, 128], strides = [1, 1]} : vector<16x128xf32> to vector<2x128xf32>
    %381 = arith.truncf %379 : vector<2x32xf32> to vector<2x32xbf16>
    %cst_113 = arith.constant dense<0.000000e+00> : vector<2x128xf32>
    %382 = tpu.matmul %381, %275, %cst_113 {dimension_numbers = #tpu.dot_dimension_numbers<[1], [0], [0], [1], [0, 0, 1, 1], [], []>} : vector<2x32xbf16>, vector<32x128xbf16>, vector<2x128xf32> -> vector<2x128xf32>
    %383 = arith.addf %380, %382 : vector<2x128xf32>
    %384 = arith.negf %383 : vector<2x128xf32>
    %385 = math.exp %384 : vector<2x128xf32>
    %cst_114 = arith.constant 1.000000e+00 : f32
    %386 = vector.broadcast %cst_114 : f32 to vector<2x128xf32>
    %387 = arith.addf %386, %385 : vector<2x128xf32>
    %388 = arith.divf %386, %387 : vector<2x128xf32>
    %389 = vector.extract_strided_slice %388 {offsets = [0, 0], sizes = [2, 32], strides = [1, 1]} : vector<2x128xf32> to vector<2x32xf32>
    %390 = vector.extract_strided_slice %388 {offsets = [0, 32], sizes = [2, 32], strides = [1, 1]} : vector<2x128xf32> to vector<2x32xf32>
    %391 = vector.extract_strided_slice %388 {offsets = [0, 64], sizes = [2, 32], strides = [1, 1]} : vector<2x128xf32> to vector<2x32xf32>
    %cst_115 = arith.constant 2.000000e+00 : f32
    %392 = vector.broadcast %cst_115 : f32 to vector<2x32xf32>
    %393 = arith.mulf %392, %391 : vector<2x32xf32>
    %cst_116 = arith.constant 1.000000e+00 : f32
    %394 = vector.broadcast %cst_116 : f32 to vector<2x32xf32>
    %395 = arith.subf %393, %394 : vector<2x32xf32>
    %396 = vector.extract_strided_slice %388 {offsets = [0, 96], sizes = [2, 32], strides = [1, 1]} : vector<2x128xf32> to vector<2x32xf32>
    %397 = arith.mulf %390, %367 : vector<2x32xf32>
    %398 = arith.mulf %389, %395 : vector<2x32xf32>
    %399 = arith.addf %397, %398 : vector<2x32xf32>
    %cst_117 = arith.constant 2.000000e+00 : f32
    %400 = vector.broadcast %cst_117 : f32 to vector<2x32xf32>
    %401 = arith.mulf %400, %399 : vector<2x32xf32>
    %402 = arith.negf %401 : vector<2x32xf32>
    %403 = math.exp %402 : vector<2x32xf32>
    %cst_118 = arith.constant 1.000000e+00 : f32
    %404 = vector.broadcast %cst_118 : f32 to vector<2x32xf32>
    %405 = arith.addf %404, %403 : vector<2x32xf32>
    %406 = arith.divf %404, %405 : vector<2x32xf32>
    %cst_119 = arith.constant 2.000000e+00 : f32
    %407 = vector.broadcast %cst_119 : f32 to vector<2x32xf32>
    %408 = arith.mulf %407, %406 : vector<2x32xf32>
    %cst_120 = arith.constant 1.000000e+00 : f32
    %409 = vector.broadcast %cst_120 : f32 to vector<2x32xf32>
    %410 = arith.subf %408, %409 : vector<2x32xf32>
    %411 = arith.mulf %396, %410 : vector<2x32xf32>
    %412 = vector.extract_strided_slice %281 {offsets = [8, 0], sizes = [2, 128], strides = [1, 1]} : vector<16x128xf32> to vector<2x128xf32>
    %413 = arith.truncf %411 : vector<2x32xf32> to vector<2x32xbf16>
    %cst_121 = arith.constant dense<0.000000e+00> : vector<2x128xf32>
    %414 = tpu.matmul %413, %275, %cst_121 {dimension_numbers = #tpu.dot_dimension_numbers<[1], [0], [0], [1], [0, 0, 1, 1], [], []>} : vector<2x32xbf16>, vector<32x128xbf16>, vector<2x128xf32> -> vector<2x128xf32>
    %415 = arith.addf %412, %414 : vector<2x128xf32>
    %416 = arith.negf %415 : vector<2x128xf32>
    %417 = math.exp %416 : vector<2x128xf32>
    %cst_122 = arith.constant 1.000000e+00 : f32
    %418 = vector.broadcast %cst_122 : f32 to vector<2x128xf32>
    %419 = arith.addf %418, %417 : vector<2x128xf32>
    %420 = arith.divf %418, %419 : vector<2x128xf32>
    %421 = vector.extract_strided_slice %420 {offsets = [0, 0], sizes = [2, 32], strides = [1, 1]} : vector<2x128xf32> to vector<2x32xf32>
    %422 = vector.extract_strided_slice %420 {offsets = [0, 32], sizes = [2, 32], strides = [1, 1]} : vector<2x128xf32> to vector<2x32xf32>
    %423 = vector.extract_strided_slice %420 {offsets = [0, 64], sizes = [2, 32], strides = [1, 1]} : vector<2x128xf32> to vector<2x32xf32>
    %cst_123 = arith.constant 2.000000e+00 : f32
    %424 = vector.broadcast %cst_123 : f32 to vector<2x32xf32>
    %425 = arith.mulf %424, %423 : vector<2x32xf32>
    %cst_124 = arith.constant 1.000000e+00 : f32
    %426 = vector.broadcast %cst_124 : f32 to vector<2x32xf32>
    %427 = arith.subf %425, %426 : vector<2x32xf32>
    %428 = vector.extract_strided_slice %420 {offsets = [0, 96], sizes = [2, 32], strides = [1, 1]} : vector<2x128xf32> to vector<2x32xf32>
    %429 = arith.mulf %422, %399 : vector<2x32xf32>
    %430 = arith.mulf %421, %427 : vector<2x32xf32>
    %431 = arith.addf %429, %430 : vector<2x32xf32>
    %cst_125 = arith.constant 2.000000e+00 : f32
    %432 = vector.broadcast %cst_125 : f32 to vector<2x32xf32>
    %433 = arith.mulf %432, %431 : vector<2x32xf32>
    %434 = arith.negf %433 : vector<2x32xf32>
    %435 = math.exp %434 : vector<2x32xf32>
    %cst_126 = arith.constant 1.000000e+00 : f32
    %436 = vector.broadcast %cst_126 : f32 to vector<2x32xf32>
    %437 = arith.addf %436, %435 : vector<2x32xf32>
    %438 = arith.divf %436, %437 : vector<2x32xf32>
    %cst_127 = arith.constant 2.000000e+00 : f32
    %439 = vector.broadcast %cst_127 : f32 to vector<2x32xf32>
    %440 = arith.mulf %439, %438 : vector<2x32xf32>
    %cst_128 = arith.constant 1.000000e+00 : f32
    %441 = vector.broadcast %cst_128 : f32 to vector<2x32xf32>
    %442 = arith.subf %440, %441 : vector<2x32xf32>
    %443 = arith.mulf %428, %442 : vector<2x32xf32>
    %444 = vector.extract_strided_slice %281 {offsets = [10, 0], sizes = [2, 128], strides = [1, 1]} : vector<16x128xf32> to vector<2x128xf32>
    %445 = arith.truncf %443 : vector<2x32xf32> to vector<2x32xbf16>
    %cst_129 = arith.constant dense<0.000000e+00> : vector<2x128xf32>
    %446 = tpu.matmul %445, %275, %cst_129 {dimension_numbers = #tpu.dot_dimension_numbers<[1], [0], [0], [1], [0, 0, 1, 1], [], []>} : vector<2x32xbf16>, vector<32x128xbf16>, vector<2x128xf32> -> vector<2x128xf32>
    %447 = arith.addf %444, %446 : vector<2x128xf32>
    %448 = arith.negf %447 : vector<2x128xf32>
    %449 = math.exp %448 : vector<2x128xf32>
    %cst_130 = arith.constant 1.000000e+00 : f32
    %450 = vector.broadcast %cst_130 : f32 to vector<2x128xf32>
    %451 = arith.addf %450, %449 : vector<2x128xf32>
    %452 = arith.divf %450, %451 : vector<2x128xf32>
    %453 = vector.extract_strided_slice %452 {offsets = [0, 0], sizes = [2, 32], strides = [1, 1]} : vector<2x128xf32> to vector<2x32xf32>
    %454 = vector.extract_strided_slice %452 {offsets = [0, 32], sizes = [2, 32], strides = [1, 1]} : vector<2x128xf32> to vector<2x32xf32>
    %455 = vector.extract_strided_slice %452 {offsets = [0, 64], sizes = [2, 32], strides = [1, 1]} : vector<2x128xf32> to vector<2x32xf32>
    %cst_131 = arith.constant 2.000000e+00 : f32
    %456 = vector.broadcast %cst_131 : f32 to vector<2x32xf32>
    %457 = arith.mulf %456, %455 : vector<2x32xf32>
    %cst_132 = arith.constant 1.000000e+00 : f32
    %458 = vector.broadcast %cst_132 : f32 to vector<2x32xf32>
    %459 = arith.subf %457, %458 : vector<2x32xf32>
    %460 = vector.extract_strided_slice %452 {offsets = [0, 96], sizes = [2, 32], strides = [1, 1]} : vector<2x128xf32> to vector<2x32xf32>
    %461 = arith.mulf %454, %431 : vector<2x32xf32>
    %462 = arith.mulf %453, %459 : vector<2x32xf32>
    %463 = arith.addf %461, %462 : vector<2x32xf32>
    %cst_133 = arith.constant 2.000000e+00 : f32
    %464 = vector.broadcast %cst_133 : f32 to vector<2x32xf32>
    %465 = arith.mulf %464, %463 : vector<2x32xf32>
    %466 = arith.negf %465 : vector<2x32xf32>
    %467 = math.exp %466 : vector<2x32xf32>
    %cst_134 = arith.constant 1.000000e+00 : f32
    %468 = vector.broadcast %cst_134 : f32 to vector<2x32xf32>
    %469 = arith.addf %468, %467 : vector<2x32xf32>
    %470 = arith.divf %468, %469 : vector<2x32xf32>
    %cst_135 = arith.constant 2.000000e+00 : f32
    %471 = vector.broadcast %cst_135 : f32 to vector<2x32xf32>
    %472 = arith.mulf %471, %470 : vector<2x32xf32>
    %cst_136 = arith.constant 1.000000e+00 : f32
    %473 = vector.broadcast %cst_136 : f32 to vector<2x32xf32>
    %474 = arith.subf %472, %473 : vector<2x32xf32>
    %475 = arith.mulf %460, %474 : vector<2x32xf32>
    %476 = vector.extract_strided_slice %281 {offsets = [12, 0], sizes = [2, 128], strides = [1, 1]} : vector<16x128xf32> to vector<2x128xf32>
    %477 = arith.truncf %475 : vector<2x32xf32> to vector<2x32xbf16>
    %cst_137 = arith.constant dense<0.000000e+00> : vector<2x128xf32>
    %478 = tpu.matmul %477, %275, %cst_137 {dimension_numbers = #tpu.dot_dimension_numbers<[1], [0], [0], [1], [0, 0, 1, 1], [], []>} : vector<2x32xbf16>, vector<32x128xbf16>, vector<2x128xf32> -> vector<2x128xf32>
    %479 = arith.addf %476, %478 : vector<2x128xf32>
    %480 = arith.negf %479 : vector<2x128xf32>
    %481 = math.exp %480 : vector<2x128xf32>
    %cst_138 = arith.constant 1.000000e+00 : f32
    %482 = vector.broadcast %cst_138 : f32 to vector<2x128xf32>
    %483 = arith.addf %482, %481 : vector<2x128xf32>
    %484 = arith.divf %482, %483 : vector<2x128xf32>
    %485 = vector.extract_strided_slice %484 {offsets = [0, 0], sizes = [2, 32], strides = [1, 1]} : vector<2x128xf32> to vector<2x32xf32>
    %486 = vector.extract_strided_slice %484 {offsets = [0, 32], sizes = [2, 32], strides = [1, 1]} : vector<2x128xf32> to vector<2x32xf32>
    %487 = vector.extract_strided_slice %484 {offsets = [0, 64], sizes = [2, 32], strides = [1, 1]} : vector<2x128xf32> to vector<2x32xf32>
    %cst_139 = arith.constant 2.000000e+00 : f32
    %488 = vector.broadcast %cst_139 : f32 to vector<2x32xf32>
    %489 = arith.mulf %488, %487 : vector<2x32xf32>
    %cst_140 = arith.constant 1.000000e+00 : f32
    %490 = vector.broadcast %cst_140 : f32 to vector<2x32xf32>
    %491 = arith.subf %489, %490 : vector<2x32xf32>
    %492 = vector.extract_strided_slice %484 {offsets = [0, 96], sizes = [2, 32], strides = [1, 1]} : vector<2x128xf32> to vector<2x32xf32>
    %493 = arith.mulf %486, %463 : vector<2x32xf32>
    %494 = arith.mulf %485, %491 : vector<2x32xf32>
    %495 = arith.addf %493, %494 : vector<2x32xf32>
    %cst_141 = arith.constant 2.000000e+00 : f32
    %496 = vector.broadcast %cst_141 : f32 to vector<2x32xf32>
    %497 = arith.mulf %496, %495 : vector<2x32xf32>
    %498 = arith.negf %497 : vector<2x32xf32>
    %499 = math.exp %498 : vector<2x32xf32>
    %cst_142 = arith.constant 1.000000e+00 : f32
    %500 = vector.broadcast %cst_142 : f32 to vector<2x32xf32>
    %501 = arith.addf %500, %499 : vector<2x32xf32>
    %502 = arith.divf %500, %501 : vector<2x32xf32>
    %cst_143 = arith.constant 2.000000e+00 : f32
    %503 = vector.broadcast %cst_143 : f32 to vector<2x32xf32>
    %504 = arith.mulf %503, %502 : vector<2x32xf32>
    %cst_144 = arith.constant 1.000000e+00 : f32
    %505 = vector.broadcast %cst_144 : f32 to vector<2x32xf32>
    %506 = arith.subf %504, %505 : vector<2x32xf32>
    %507 = arith.mulf %492, %506 : vector<2x32xf32>
    %508 = vector.extract_strided_slice %281 {offsets = [14, 0], sizes = [2, 128], strides = [1, 1]} : vector<16x128xf32> to vector<2x128xf32>
    %509 = arith.truncf %507 : vector<2x32xf32> to vector<2x32xbf16>
    %cst_145 = arith.constant dense<0.000000e+00> : vector<2x128xf32>
    %510 = tpu.matmul %509, %275, %cst_145 {dimension_numbers = #tpu.dot_dimension_numbers<[1], [0], [0], [1], [0, 0, 1, 1], [], []>} : vector<2x32xbf16>, vector<32x128xbf16>, vector<2x128xf32> -> vector<2x128xf32>
    %511 = arith.addf %508, %510 : vector<2x128xf32>
    %512 = arith.negf %511 : vector<2x128xf32>
    %513 = math.exp %512 : vector<2x128xf32>
    %cst_146 = arith.constant 1.000000e+00 : f32
    %514 = vector.broadcast %cst_146 : f32 to vector<2x128xf32>
    %515 = arith.addf %514, %513 : vector<2x128xf32>
    %516 = arith.divf %514, %515 : vector<2x128xf32>
    %517 = vector.extract_strided_slice %516 {offsets = [0, 0], sizes = [2, 32], strides = [1, 1]} : vector<2x128xf32> to vector<2x32xf32>
    %518 = vector.extract_strided_slice %516 {offsets = [0, 32], sizes = [2, 32], strides = [1, 1]} : vector<2x128xf32> to vector<2x32xf32>
    %519 = vector.extract_strided_slice %516 {offsets = [0, 64], sizes = [2, 32], strides = [1, 1]} : vector<2x128xf32> to vector<2x32xf32>
    %cst_147 = arith.constant 2.000000e+00 : f32
    %520 = vector.broadcast %cst_147 : f32 to vector<2x32xf32>
    %521 = arith.mulf %520, %519 : vector<2x32xf32>
    %cst_148 = arith.constant 1.000000e+00 : f32
    %522 = vector.broadcast %cst_148 : f32 to vector<2x32xf32>
    %523 = arith.subf %521, %522 : vector<2x32xf32>
    %524 = vector.extract_strided_slice %516 {offsets = [0, 96], sizes = [2, 32], strides = [1, 1]} : vector<2x128xf32> to vector<2x32xf32>
    %525 = arith.mulf %518, %495 : vector<2x32xf32>
    %526 = arith.mulf %517, %523 : vector<2x32xf32>
    %527 = arith.addf %525, %526 : vector<2x32xf32>
    %cst_149 = arith.constant 2.000000e+00 : f32
    %528 = vector.broadcast %cst_149 : f32 to vector<2x32xf32>
    %529 = arith.mulf %528, %527 : vector<2x32xf32>
    %530 = arith.negf %529 : vector<2x32xf32>
    %531 = math.exp %530 : vector<2x32xf32>
    %cst_150 = arith.constant 1.000000e+00 : f32
    %532 = vector.broadcast %cst_150 : f32 to vector<2x32xf32>
    %533 = arith.addf %532, %531 : vector<2x32xf32>
    %534 = arith.divf %532, %533 : vector<2x32xf32>
    %cst_151 = arith.constant 2.000000e+00 : f32
    %535 = vector.broadcast %cst_151 : f32 to vector<2x32xf32>
    %536 = arith.mulf %535, %534 : vector<2x32xf32>
    %cst_152 = arith.constant 1.000000e+00 : f32
    %537 = vector.broadcast %cst_152 : f32 to vector<2x32xf32>
    %538 = arith.subf %536, %537 : vector<2x32xf32>
    %539 = arith.mulf %524, %538 : vector<2x32xf32>
    %c112 = arith.constant 112 : index
    %c0_153 = arith.constant 0 : index
    %540 = vector.load %arg1[%c112, %c0_153] : memref<144x128xbf16, #tpu.memory_space<vmem>>, vector<32x128xbf16>
    %c2_154 = arith.constant 2 : index
    %c0_155 = arith.constant 0 : index
    %541 = vector.load %arg2[%c2_154, %c0_155] : memref<3x128xf32, #tpu.memory_space<vmem>>, vector<1x128xf32>
    %542 = arith.truncf %539 : vector<2x32xf32> to vector<2x32xbf16>
    %cst_156 = arith.constant dense<0.000000e+00> : vector<2x128xf32>
    %543 = tpu.matmul %542, %540, %cst_156 {dimension_numbers = #tpu.dot_dimension_numbers<[1], [0], [0], [1], [0, 0, 1, 1], [], []>} : vector<2x32xbf16>, vector<32x128xbf16>, vector<2x128xf32> -> vector<2x128xf32>
    %544 = vector.broadcast %541 : vector<1x128xf32> to vector<2x128xf32>
    %545 = arith.addf %543, %544 : vector<2x128xf32>
    %546 = vector.extract_strided_slice %545 {offsets = [0, 0], sizes = [2, 4], strides = [1, 1]} : vector<2x128xf32> to vector<2x4xf32>
    %c0_157 = arith.constant 0 : index
    %c0_158 = arith.constant 0 : index
    %547 = vector.load %arg3[%c0_157, %c0_158] : memref<2x4xf32, #tpu.memory_space<vmem>>, vector<2x4xf32>
    tpu.vector_store %arg3[%c0_157, %c0_158], %546 {strides = array<i32>} : memref<2x4xf32, #tpu.memory_space<vmem>>, vector<2x4xf32>,
    return
  }
}

</mosaic_0001>

<bundles_post_ra>
// kernel: lstm_forward.1
= control target key start
LH: loop header
LB: loop body
LE: loop exit
PB: predicated region body
PF: predicated region fallthrough
CT: control target
= control target key end

     0   :  { %v2146_v1 = vmov 0.0   ;;  %vm2147_vm0 = vmmov 0   ;;  %vm36_vm1 = vcmask 130048   ;;  %s2484_s0 = inlined_call_operand.vmem [shape: f32[16,16], index: 0, kind: input, shape index: {}]   ;;  %s2485_s1 = inlined_call_operand.vmem [shape: bf16[144,128], index: 1, kind: input, shape index: {}]   ;;  %s2486_s2 = inlined_call_operand.vmem [shape: f32[3,128], index: 2, kind: input, shape index: {}]   ;;  %s2487_s3 = inlined_call_operand.hbm [shape: f32[2,4], index: 3, kind: output, shape index: {}]  }
   0x1   :  { %v1985_v0 = vld [vmem:[%s2485_s1] sm:$0xff]   ;;  %1829 = vmatprep.subr.bf16.mxu0 %v2146_v1  ;;  %1835 = vmatprep.subr.bf16.mxu1 %v2146_v1  ;;  %v2180_v2 = vld [vmem:[%s2485_s1 + $0x8] sm:$0xff]   ;;  %v2194_v6 = vld [vmem:[%s2485_s1 + $0x10] sm:$0xff]  }
   0x2   :  { %1830 = vmatpush3.bf16.msra.mxu0 %v1985_v0  ;;  %1831 = vmatprep.mubr.msk.bf16.mxu0 %vm2147_vm0, %v2146_v1  ;;  %v23_v3 = vld [vmem:[%s2484_s0] sm:$0xff]  ;;  %v24_v4 = vld [vmem:[%s2484_s0 + $0x8] sm:$0xff] }
   0x3   :  { %1836 = vmatpush3.bf16.msra.mxu1 %v2180_v2  ;;  %v25_v5 = vpack.c.bf16 %v24_v4, %v23_v3  ;;  %1839 = vmatprep.mubr.msk.bf16.mxu1 %vm2147_vm0, %v2146_v1 }
   0x4   :  { %1837 = vmatprep.subr.bf16.mxu1 %v2146_v1  ;;  %1843 = vmatprep.subr.bf16.mxu0 %v2146_v1 }
   0x5   :  { %1832 = vmatmul.mubr.msk.bf16.vlgmr.msra.gmra.mrb[0].mxu0 %vm36_vm1, %v25_v5 }
   0x6   :  { %1844 = vmatpush3.bf16.msra.mxu0 %v2180_v2  ;;  %1847 = vmatprep.mubr.msk.bf16.mxu0 %vm2147_vm0, %v2146_v1 }
   0x7   :  { %1838 = vmatpush3.bf16.msra.mxu1 %v2194_v6  ;;  %1845 = vmatprep.subr.bf16.mxu0 %v2146_v1 }
   0x8   :  { %1851 = vmatprep.subr.bf16.mxu1 %v2146_v1 }
   0x9   :  { %8 = vsyncpa [#allocation4], 0  ;;  %v2148_v7 = vmov 0   ;;  %v1680_v8 = vld [vmem:[%s2486_s2] ss:$0 sm:$0xff]  ;;  %s2149_s23 = smov 64  }
   0xa   :  { %1840 = vmatmul.mubr.bf16.vlgmr.msra.gmra.mrb[0].mxu1 %v2148_v7  ;;  %1846 = vmatpush3.bf16.msra.mxu0 %v2194_v6  ;;  %s2150_s24 = smov 32   ;;  %vm93_vm2 = vcmask 261120   ;;  %vm175_vm3 = vcmask 254976   ;;  %vm362_vm4 = vcmask 259076   ;;  %vm268_vm5 = vcmask 257026  }
   0xb   :  { %1852 = vmatpush3.bf16.msra.mxu1 %v2180_v2  ;;  %1855 = vmatprep.mubr.msk.bf16.mxu1 %vm2147_vm0, %v2146_v1  ;;  %vm456_vm6 = vcmask 261126   ;;  %vm1664_vm7 = vcmask 25600  }
   0xc   :  { %1853 = vmatprep.subr.bf16.mxu1 %v2146_v1  ;;  %1859 = vmatprep.subr.bf16.mxu0 %v2146_v1 }
   0xf   :  { %1854 = vmatpush3.bf16.msra.mxu1 %v2194_v6 }
  0x10   :  { %1867 = vmatprep.subr.bf16.mxu1 %v2146_v1 }
  0xd8   :  { %v74_v9 = vpop.f32.mrb[0].mxu0 }
  0xd9   :  { %v1833_v10 = vpop.f32.mrb[1].mxu0  ;;  %v2218_v11 = vadd.f32 %v1680_v8, %v74_v9 }
  0xda   :  { %v77_v12 = vpop.f32.mrb[2].mxu0 }
  0xdb   :  { %v2220_v13 = vadd.f32 %v1680_v8, %v77_v12  ;;  %v1834_v14 = vpop.f32.mrb[3].mxu0 }
  0xdd   :  { %v131_v15 = vpop.f32.mrb[0].mxu1 }
  0xde   :  { %v137_v16 = vadd.f32 %v131_v15, %v2218_v11  ;;  %v1841_v17 = vpop.f32.mrb[1].mxu1 }
  0xdf   :  { %v134_v18 = vpop.f32.mrb[2].mxu1 }
  0xe0   :  { %v1685_v19 = vmul.f32 -1.442695, %v137_v16  ;;  %v1842_v20 = vpop.f32.mrb[3].mxu1 }
  0xe2   :  { %1994 = vpow2.f32 %v1685_v19 }
  0xec   :  { %v1995_v21 = vpop.eup %1994 }
  0xed   :  { %v141_v22 = vadd.f32 1.0, %v1995_v21 }
  0xef   :  { %1996 = vrcp.f32 %v141_v22 }
  0xf9   :  { %v1997_v23 = vpop.eup %1996 }
  0xfa   :  { %v144_v24 = vmul.f32 2.0, %v1997_v23  ;;  %v146_v28 = vmul.f32 0.0, %v1997_v23 }
  0xfc   :  { %v1686_v25 = vadd.f32 -1.0, %v144_v24 }
  0xfe   :  { %148 = vrot.lane.b32.xlu0 %v1686_v25, %s2149_s23 }
 0x170   :  { %v149_v26 = vpop.permute.xlu0 %148 }
 0x171   :  { %v151_v27 = vmul.f32 %v1997_v23, %v149_v26 }
 0x173   :  { %153 = vrot.lane.b32.xlu0 %v151_v27, %s2150_s24 }
 0x1e5   :  { %v154_v29 = vpop.permute.xlu0 %153 }
 0x1e6   :  { %v156_v30 = vadd.f32 %v154_v29, %v146_v28 }
 0x1e8   :  { %v1687_v31 = vmul.f32 -2.0, %v156_v30  ;;  %v237_v56 = vrot.slane %v156_v30, 6 }
 0x1ea   :  { %v159_v32 = vmul.f32 1.442695, %v1687_v31 }
 0x1ec   :  { %1998 = vpow2.f32 %v159_v32 }
 0x1f6   :  { %v1999_v33 = vpop.eup %1998 }
 0x1f7   :  { %v161_v34 = vadd.f32 1.0, %v1999_v33 }
 0x1f9   :  { %2000 = vrcp.f32 %v161_v34 }
 0x203   :  { %v2001_v35 = vpop.eup %2000 }
 0x204   :  { %v164_v36 = vmul.f32 2.0, %v2001_v35 }
 0x206   :  { %v1688_v37 = vadd.f32 -1.0, %v164_v36 }
 0x208   :  { %167 = vrot.lane.b32.xlu1 %v1688_v37, %s2149_s23 }
 0x27a   :  { %v168_v38 = vpop.permute.xlu1 %167 }
 0x27b   :  { %v2226_v39 = vmul.f32 %v1997_v23, %v168_v38 }
 0x27d   :  { %v177_v40 = vpack.c.bf16 %v2226_v39, %v2226_v39 }
 0x27f   :  { %179 = vrot.lane.b32.xlu1 %v177_v40, %s2150_s24 }
 0x2f1   :  { %v180_v41 = vpop.permute.xlu1 %179 }
 0x2f2   :  { %1848 = vmatmul.mubr.msk.bf16.vlgmr.msra.gmra.mrb[4].mxu0 %vm93_vm2, %v180_v41 }
 0x2f3   :  { %1860 = vmatpush3.bf16.msra.mxu0 %v2180_v2  ;;  %1863 = vmatprep.mubr.msk.bf16.mxu0 %vm2147_vm0, %v2146_v1 }
 0x2f4   :  { %1861 = vmatprep.subr.bf16.mxu0 %v2146_v1 }
 0x2f7   :  { %1862 = vmatpush3.bf16.msra.mxu0 %v2194_v6 }
 0x2f8   :  { %1875 = vmatprep.subr.bf16.mxu0 %v2146_v1 }
 0x3c5   :  { %v218_v42 = vpop.f32.mrb[4].mxu0 }
 0x3c6   :  { %v225_v43 = vrot.slane %v218_v42, 6  ;;  %v1849_v44 = vpop.f32.mrb[5].mxu0 }
 0x3c7   :  { %v221_v45 = vpop.f32.mrb[6].mxu0 }
 0x3c8   :  { %v227_v46 = vadd.f32 %v225_v43, %v2218_v11  ;;  %v1850_v47 = vpop.f32.mrb[7].mxu0 }
 0x3ca   :  { %v1690_v48 = vmul.f32 -1.442695, %v227_v46 }
 0x3cc   :  { %2002 = vpow2.f32 %v1690_v48 }
 0x3d6   :  { %v2003_v49 = vpop.eup %2002 }
 0x3d7   :  { %v231_v50 = vadd.f32 1.0, %v2003_v49 }
 0x3d9   :  { %2004 = vrcp.f32 %v231_v50 }
 0x3e3   :  { %v2005_v51 = vpop.eup %2004 }
 0x3e4   :  { %v234_v52 = vmul.f32 2.0, %v2005_v51  ;;  %v239_v57 = vmul.f32 %v2005_v51, %v237_v56 }
 0x3e6   :  { %v1691_v53 = vadd.f32 -1.0, %v234_v52 }
 0x3e8   :  { %241 = vrot.lane.b32.xlu0 %v1691_v53, %s2149_s23 }
 0x45a   :  { %v242_v54 = vpop.permute.xlu0 %241 }
 0x45b   :  { %v244_v55 = vmul.f32 %v2005_v51, %v242_v54 }
 0x45d   :  { %246 = vrot.lane.b32.xlu1 %v244_v55, %s2150_s24 }
 0x4cf   :  { %v247_v58 = vpop.permute.xlu1 %246 }
 0x4d0   :  { %v249_v59 = vadd.f32 %v247_v58, %v239_v57 }
 0x4d2   :  { %v1692_v60 = vmul.f32 -2.0, %v249_v59  ;;  %v331_v28 = vrot.slane %v249_v59, 6 }
 0x4d4   :  { %v252_v61 = vmul.f32 1.442695, %v1692_v60 }
 0x4d6   :  { %2006 = vpow2.f32 %v252_v61 }
 0x4e0   :  { %v2007_v62 = vpop.eup %2006 }
 0x4e1   :  { %v254_v63 = vadd.f32 1.0, %v2007_v62 }
 0x4e3   :  { %2008 = vrcp.f32 %v254_v63 }
 0x4ed   :  { %v2009_v0 = vpop.eup %2008 }
 0x4ee   :  { %v257_v3 = vmul.f32 2.0, %v2009_v0 }
 0x4f0   :  { %v1693_v4 = vadd.f32 -1.0, %v257_v3 }
 0x4f2   :  { %260 = vrot.lane.b32.xlu0 %v1693_v4, %s2149_s23 }
 0x564   :  { %v261_v5 = vpop.permute.xlu0 %260 }
 0x565   :  { %v2242_v8 = vmul.f32 %v2005_v51, %v261_v5 }
 0x567   :  { %v270_v9 = vpack.c.bf16 %v2242_v8, %v2242_v8 }
 0x569   :  { %v272_v10 = vrot.slane %v270_v9, 1 }
 0x56b   :  { %273 = vrot.lane.b32.xlu1 %v272_v10, %s2150_s24 }
 0x5dd   :  { %v274_v12 = vpop.permute.xlu1 %273 }
 0x5de   :  { %1856 = vmatmul.mubr.msk.bf16.vlgmr.msra.gmra.mrb[4].mxu1 %vm93_vm2, %v274_v12 }
 0x5df   :  { %1868 = vmatpush3.bf16.msra.mxu1 %v2180_v2  ;;  %1871 = vmatprep.mubr.msk.bf16.mxu1 %vm2147_vm0, %v2146_v1 }
 0x5e0   :  { %1869 = vmatprep.subr.bf16.mxu1 %v2146_v1 }
 0x5e3   :  { %1870 = vmatpush3.bf16.msra.mxu1 %v2194_v6 }
 0x5e4   :  { %1883 = vmatprep.subr.bf16.mxu1 %v2146_v1 }
 0x6b1   :  { %v312_v14 = vpop.f32.mrb[4].mxu1 }
 0x6b2   :  { %v319_v15 = vrot.slane %v312_v14, 4  ;;  %v1857_v16 = vpop.f32.mrb[5].mxu1 }
 0x6b3   :  { %v315_v17 = vpop.f32.mrb[6].mxu1 }
 0x6b4   :  { %v321_v18 = vadd.f32 %v319_v15, %v2218_v11  ;;  %v1858_v19 = vpop.f32.mrb[7].mxu1 }
 0x6b6   :  { %v1695_v20 = vmul.f32 -1.442695, %v321_v18 }
 0x6b8   :  { %2010 = vpow2.f32 %v1695_v20 }
 0x6c2   :  { %v2011_v21 = vpop.eup %2010 }
 0x6c3   :  { %v325_v22 = vadd.f32 1.0, %v2011_v21 }
 0x6c5   :  { %2012 = vrcp.f32 %v325_v22 }
 0x6cf   :  { %v2013_v23 = vpop.eup %2012 }
 0x6d0   :  { %v328_v24 = vmul.f32 2.0, %v2013_v23  ;;  %v333_v29 = vmul.f32 %v2013_v23, %v331_v28 }
 0x6d2   :  { %v1696_v25 = vadd.f32 -1.0, %v328_v24 }
 0x6d4   :  { %335 = vrot.lane.b32.xlu0 %v1696_v25, %s2149_s23 }
 0x746   :  { %v336_v26 = vpop.permute.xlu0 %335 }
 0x747   :  { %v338_v27 = vmul.f32 %v2013_v23, %v336_v26 }
 0x749   :  { %340 = vrot.lane.b32.xlu1 %v338_v27, %s2150_s24 }
 0x7bb   :  { %v341_v30 = vpop.permute.xlu1 %340 }
 0x7bc   :  { %v343_v31 = vadd.f32 %v341_v30, %v333_v29 }
 0x7be   :  { %v1697_v32 = vmul.f32 -2.0, %v343_v31  ;;  %v425_v59 = vrot.slane %v343_v31, 6 }
 0x7c0   :  { %v346_v33 = vmul.f32 1.442695, %v1697_v32 }
 0x7c2   :  { %2014 = vpow2.f32 %v346_v33 }
 0x7cc   :  { %v2015_v34 = vpop.eup %2014 }
 0x7cd   :  { %v348_v35 = vadd.f32 1.0, %v2015_v34 }
 0x7cf   :  { %2016 = vrcp.f32 %v348_v35 }
 0x7d9   :  { %v2017_v36 = vpop.eup %2016 }
 0x7da   :  { %v351_v37 = vmul.f32 2.0, %v2017_v36 }
 0x7dc   :  { %v1698_v38 = vadd.f32 -1.0, %v351_v37 }
 0x7de   :  { %354 = vrot.lane.b32.xlu0 %v1698_v38, %s2149_s23 }
 0x850   :  { %v355_v40 = vpop.permute.xlu0 %354 }
 0x851   :  { %v2258_v41 = vmul.f32 %v2013_v23, %v355_v40 }
 0x853   :  { %v364_v42 = vpack.c.bf16 %v2258_v41, %v2258_v41 }
 0x855   :  { %v366_v43 = vrot.slane %v364_v42, 2 }
 0x857   :  { %367 = vrot.lane.b32.xlu1 %v366_v43, %s2150_s24 }
 0x8c9   :  { %v368_v44 = vpop.permute.xlu1 %367 }
 0x8ca   :  { %1864 = vmatmul.mubr.msk.bf16.vlgmr.msra.gmra.mrb[8].mxu0 %vm93_vm2, %v368_v44 }
 0x8cb   :  { %1876 = vmatpush3.bf16.msra.mxu0 %v2180_v2  ;;  %1879 = vmatprep.mubr.msk.bf16.mxu0 %vm2147_vm0, %v2146_v1 }
 0x8cc   :  { %1877 = vmatprep.subr.bf16.mxu0 %v2146_v1 }
 0x8cf   :  { %1878 = vmatpush3.bf16.msra.mxu0 %v2194_v6 }
 0x8d0   :  { %1891 = vmatprep.subr.bf16.mxu0 %v2146_v1 }
 0x99d   :  { %v406_v45 = vpop.f32.mrb[8].mxu0 }
 0x99e   :  { %v413_v46 = vrot.slane %v406_v45, 2  ;;  %v1865_v47 = vpop.f32.mrb[9].mxu0 }
 0x99f   :  { %v409_v48 = vpop.f32.mrb[10].mxu0 }
 0x9a0   :  { %v415_v49 = vadd.f32 %v413_v46, %v2218_v11  ;;  %v1866_v50 = vpop.f32.mrb[11].mxu0 }
 0x9a2   :  { %v1700_v51 = vmul.f32 -1.442695, %v415_v49 }
 0x9a4   :  { %2018 = vpow2.f32 %v1700_v51 }
 0x9ae   :  { %v2019_v52 = vpop.eup %2018 }
 0x9af   :  { %v419_v53 = vadd.f32 1.0, %v2019_v52 }
 0x9b1   :  { %2020 = vrcp.f32 %v419_v53 }
 0x9bb   :  { %v2021_v54 = vpop.eup %2020 }
 0x9bc   :  { %v422_v55 = vmul.f32 2.0, %v2021_v54  ;;  %v427_v60 = vmul.f32 %v2021_v54, %v425_v59 }
 0x9be   :  { %v1701_v56 = vadd.f32 -1.0, %v422_v55 }
 0x9c0   :  { %429 = vrot.lane.b32.xlu0 %v1701_v56, %s2149_s23 }
 0xa32   :  { %v430_v57 = vpop.permute.xlu0 %429 }
 0xa33   :  { %v432_v58 = vmul.f32 %v2021_v54, %v430_v57 }
 0xa35   :  { %434 = vrot.lane.b32.xlu1 %v432_v58, %s2150_s24 }
 0xaa7   :  { %v435_v61 = vpop.permute.xlu1 %434 }
 0xaa8   :  { %v437_v62 = vadd.f32 %v435_v61, %v427_v60 }
 0xaaa   :  { %v1702_v11 = vmul.f32 -2.0, %v437_v62  ;;  %v516_v30 = vrot.slane %v437_v62, 6 }
 0xaac   :  { %v440_v63 = vmul.f32 1.442695, %v1702_v11 }
 0xaae   :  { %2022 = vpow2.f32 %v440_v63 }
 0xab8   :  { %v2023_v0 = vpop.eup %2022 }
 0xab9   :  { %v442_v3 = vadd.f32 1.0, %v2023_v0 }
 0xabb   :  { %2024 = vrcp.f32 %v442_v3 }
 0xac5   :  { %v2025_v4 = vpop.eup %2024 }
 0xac6   :  { %v445_v5 = vmul.f32 2.0, %v2025_v4 }
 0xac8   :  { %v1703_v9 = vadd.f32 -1.0, %v445_v5 }
 0xaca   :  { %448 = vrot.lane.b32.xlu0 %v1703_v9, %s2149_s23 }
 0xb3c   :  { %v449_v10 = vpop.permute.xlu0 %448 }
 0xb3d   :  { %v2274_v12 = vmul.f32 %v2021_v54, %v449_v10 }
 0xb3f   :  { %v458_v14 = vpack.c.bf16 %v2274_v12, %v2274_v12 }
 0xb41   :  { %v460_v15 = vrot.slane %v458_v14, 3 }
 0xb43   :  { %461 = vrot.lane.b32.xlu1 %v460_v15, %s2150_s24 }
 0xbb5   :  { %v462_v16 = vpop.permute.xlu1 %461 }
 0xbb6   :  { %1872 = vmatmul.mubr.msk.bf16.vlgmr.msra.gmra.mrb[8].mxu1 %vm93_vm2, %v462_v16 }
 0xbb7   :  { %1884 = vmatpush3.bf16.msra.mxu1 %v2180_v2  ;;  %1887 = vmatprep.mubr.msk.bf16.mxu1 %vm2147_vm0, %v2146_v1 }
 0xbb8   :  { %1885 = vmatprep.subr.bf16.mxu1 %v2146_v1 }
 0xbbb   :  { %1886 = vmatpush3.bf16.msra.mxu1 %v2194_v6 }
 0xbbc   :  { %1899 = vmatprep.subr.bf16.mxu1 %v2146_v1 }
 0xc89   :  { %v500_v17 = vpop.f32.mrb[8].mxu1 }
 0xc8a   :  { %v506_v18 = vadd.f32 %v500_v17, %v2220_v13  ;;  %v1873_v19 = vpop.f32.mrb[9].mxu1 }
 0xc8b   :  { %v503_v20 = vpop.f32.mrb[10].mxu1 }
 0xc8c   :  { %v1705_v21 = vmul.f32 -1.442695, %v506_v18  ;;  %v1874_v22 = vpop.f32.mrb[11].mxu1 }
 0xc8e   :  { %2026 = vpow2.f32 %v1705_v21 }
 0xc98   :  { %v2027_v23 = vpop.eup %2026 }
 0xc99   :  { %v510_v24 = vadd.f32 1.0, %v2027_v23 }
 0xc9b   :  { %2028 = vrcp.f32 %v510_v24 }
 0xca5   :  { %v2029_v25 = vpop.eup %2028 }
 0xca6   :  { %v513_v26 = vmul.f32 2.0, %v2029_v25  ;;  %v518_v31 = vmul.f32 %v2029_v25, %v516_v30 }
 0xca8   :  { %v1706_v27 = vadd.f32 -1.0, %v513_v26 }
 0xcaa   :  { %520 = vrot.lane.b32.xlu0 %v1706_v27, %s2149_s23 }
 0xd1c   :  { %v521_v28 = vpop.permute.xlu0 %520 }
 0xd1d   :  { %v523_v29 = vmul.f32 %v2029_v25, %v521_v28 }
 0xd1f   :  { %525 = vrot.lane.b32.xlu1 %v523_v29, %s2150_s24 }
 0xd91   :  { %v526_v32 = vpop.permute.xlu1 %525 }
 0xd92   :  { %v528_v33 = vadd.f32 %v526_v32, %v518_v31 }
 0xd94   :  { %v1707_v34 = vmul.f32 -2.0, %v528_v33  ;;  %v608_v59 = vrot.slane %v528_v33, 6 }
 0xd96   :  { %v531_v35 = vmul.f32 1.442695, %v1707_v34 }
 0xd98   :  { %2030 = vpow2.f32 %v531_v35 }
 0xda2   :  { %v2031_v36 = vpop.eup %2030 }
 0xda3   :  { %v533_v37 = vadd.f32 1.0, %v2031_v36 }
 0xda5   :  { %2032 = vrcp.f32 %v533_v37 }
 0xdaf   :  { %v2033_v38 = vpop.eup %2032 }
 0xdb0   :  { %v536_v40 = vmul.f32 2.0, %v2033_v38 }
 0xdb2   :  { %v1708_v42 = vadd.f32 -1.0, %v536_v40 }
 0xdb4   :  { %539 = vrot.lane.b32.xlu0 %v1708_v42, %s2149_s23 }
 0xe26   :  { %v540_v43 = vpop.permute.xlu0 %539 }
 0xe27   :  { %v2290_v44 = vmul.f32 %v2029_v25, %v540_v43 }
 0xe29   :  { %v548_v45 = vpack.c.bf16 %v2290_v44, %v2290_v44 }
 0xe2b   :  { %550 = vrot.lane.b32.xlu1 %v548_v45, %s2150_s24 }
 0xe9d   :  { %v551_v46 = vpop.permute.xlu1 %550 }
 0xe9e   :  { %1880 = vmatmul.mubr.msk.bf16.vlgmr.msra.gmra.mrb[12].mxu0 %vm93_vm2, %v551_v46 }
 0xe9f   :  { %1892 = vmatpush3.bf16.msra.mxu0 %v2180_v2  ;;  %1895 = vmatprep.mubr.msk.bf16.mxu0 %vm2147_vm0, %v2146_v1 }
 0xea0   :  { %1893 = vmatprep.subr.bf16.mxu0 %v2146_v1 }
 0xea3   :  { %1894 = vmatpush3.bf16.msra.mxu0 %v2194_v6 }
 0xea4   :  { %1907 = vmatprep.subr.bf16.mxu0 %v2146_v1 }
 0xf71   :  { %v589_v47 = vpop.f32.mrb[12].mxu0 }
 0xf72   :  { %v596_v48 = vrot.slane %v589_v47, 6  ;;  %v1881_v49 = vpop.f32.mrb[13].mxu0 }
 0xf73   :  { %v592_v50 = vpop.f32.mrb[14].mxu0 }
 0xf74   :  { %v598_v51 = vadd.f32 %v596_v48, %v2220_v13  ;;  %v1882_v52 = vpop.f32.mrb[15].mxu0 }
 0xf76   :  { %v1710_v53 = vmul.f32 -1.442695, %v598_v51 }
 0xf78   :  { %2034 = vpow2.f32 %v1710_v53 }
 0xf82   :  { %v2035_v54 = vpop.eup %2034 }
 0xf83   :  { %v602_v2 = vadd.f32 1.0, %v2035_v54 }
 0xf85   :  { %2036 = vrcp.f32 %v602_v2 }
 0xf8f   :  { %v2037_v55 = vpop.eup %2036 }
 0xf90   :  { %v605_v56 = vmul.f32 2.0, %v2037_v55  ;;  %v610_v60 = vmul.f32 %v2037_v55, %v608_v59 }
 0xf92   :  { %v1711_v57 = vadd.f32 -1.0, %v605_v56 }
 0xf94   :  { %612 = vrot.lane.b32.xlu0 %v1711_v57, %s2149_s23 }
0x1006   :  { %v613_v6 = vpop.permute.xlu0 %612 }
0x1007   :  { %v615_v58 = vmul.f32 %v2037_v55, %v613_v6 }
0x1009   :  { %617 = vrot.lane.b32.xlu1 %v615_v58, %s2150_s24 }
0x107b   :  { %v618_v61 = vpop.permute.xlu1 %617 }
0x107c   :  { %v620_v62 = vadd.f32 %v618_v61, %v610_v60 }
0x107e   :  { %v1712_v11 = vmul.f32 -2.0, %v620_v62  ;;  %v701_v32 = vrot.slane %v620_v62, 6 }
0x1080   :  { %v623_v63 = vmul.f32 1.442695, %v1712_v11 }
0x1082   :  { %2038 = vpow2.f32 %v623_v63 }
0x108c   :  { %v2039_v0 = vpop.eup %2038 }
0x108d   :  { %v625_v3 = vadd.f32 1.0, %v2039_v0 }
0x108f   :  { %2040 = vrcp.f32 %v625_v3 }
0x1099   :  { %v2041_v4 = vpop.eup %2040 }
0x109a   :  { %v628_v5 = vmul.f32 2.0, %v2041_v4 }
0x109c   :  { %v1713_v9 = vadd.f32 -1.0, %v628_v5 }
0x109e   :  { %631 = vrot.lane.b32.xlu0 %v1713_v9, %s2149_s23 }
0x1110   :  { %v632_v10 = vpop.permute.xlu0 %631 }
0x1111   :  { %v2306_v14 = vmul.f32 %v2037_v55, %v632_v10 }
0x1113   :  { %v640_v15 = vpack.c.bf16 %v2306_v14, %v2306_v14 }
0x1115   :  { %v642_v16 = vrot.slane %v640_v15, 1 }
0x1117   :  { %643 = vrot.lane.b32.xlu1 %v642_v16, %s2150_s24 }
0x1189   :  { %v644_v17 = vpop.permute.xlu1 %643 }
0x118a   :  { %1888 = vmatmul.mubr.msk.bf16.vlgmr.msra.gmra.mrb[12].mxu1 %vm93_vm2, %v644_v17 }
0x118b   :  { %1903 = vmatprep.mubr.msk.bf16.mxu1 %vm2147_vm0, %v2146_v1 }
0x125d   :  { %v682_v18 = vpop.f32.mrb[12].mxu1 }
0x125e   :  { %v689_v19 = vrot.slane %v682_v18, 4  ;;  %v1889_v20 = vpop.f32.mrb[13].mxu1  ;;  %v1988_v18 = vld [vmem:[%s2485_s1 + $0x18] sm:$0xff]  }
0x125f   :  { %v685_v21 = vpop.f32.mrb[14].mxu1  ;;  %1900 = vmatpush3.bf16.msra.mxu1 %v1988_v18 }
0x1260   :  { %v691_v22 = vadd.f32 %v689_v19, %v2220_v13  ;;  %v1890_v23 = vpop.f32.mrb[15].mxu1  ;;  %v2345_v19 = vld [vmem:[%s2485_s1 + $0x28] sm:$0xff]   ;;  %1901 = vmatprep.subr.bf16.mxu1 %v2146_v1 }
0x1262   :  { %v1715_v24 = vmul.f32 -1.442695, %v691_v22 }
0x1264   :  { %2042 = vpow2.f32 %v1715_v24 }
0x126e   :  { %v2043_v25 = vpop.eup %2042 }
0x126f   :  { %v695_v26 = vadd.f32 1.0, %v2043_v25 }
0x1271   :  { %2044 = vrcp.f32 %v695_v26 }
0x127b   :  { %v2045_v27 = vpop.eup %2044 }
0x127c   :  { %v698_v28 = vmul.f32 2.0, %v2045_v27  ;;  %v703_v33 = vmul.f32 %v2045_v27, %v701_v32 }
0x127e   :  { %v1716_v29 = vadd.f32 -1.0, %v698_v28 }
0x1280   :  { %705 = vrot.lane.b32.xlu0 %v1716_v29, %s2149_s23 }
0x12f2   :  { %v706_v30 = vpop.permute.xlu0 %705 }
0x12f3   :  { %v708_v31 = vmul.f32 %v2045_v27, %v706_v30 }
0x12f5   :  { %710 = vrot.lane.b32.xlu1 %v708_v31, %s2150_s24  ;;  %v1724_v31 = vld [vmem:[%s2486_s2 + $0x1] ss:$0 sm:$0xff] }
0x1367   :  { %v711_v34 = vpop.permute.xlu1 %710 }
0x1368   :  { %v713_v35 = vadd.f32 %v711_v34, %v703_v33 }
0x136a   :  { %v1717_v36 = vmul.f32 -2.0, %v713_v35 }
0x136c   :  { %v716_v37 = vmul.f32 1.442695, %v1717_v36 }
0x136e   :  { %2046 = vpow2.f32 %v716_v37 }
0x1378   :  { %v2047_v38 = vpop.eup %2046 }
0x1379   :  { %v718_v40 = vadd.f32 1.0, %v2047_v38 }
0x137b   :  { %2048 = vrcp.f32 %v718_v40 }
0x1385   :  { %v2049_v42 = vpop.eup %2048 }
0x1386   :  { %v721_v43 = vmul.f32 2.0, %v2049_v42 }
0x1388   :  { %v1718_v45 = vadd.f32 -1.0, %v721_v43 }
0x138a   :  { %724 = vrot.lane.b32.xlu0 %v1718_v45, %s2149_s23 }
0x13fc   :  { %v725_v46 = vpop.permute.xlu0 %724 }
0x13fd   :  { %v727_v47 = vmul.f32 %v2045_v27, %v725_v46 }
0x13ff   :  { %v733_v48 = vpack.c.bf16 %v727_v47, %v727_v47 }
0x1401   :  { %v735_v49 = vrot.slane %v733_v48, 2 }
0x1403   :  { %736 = vrot.lane.b32.xlu1 %v735_v49, %s2150_s24 }
0x1475   :  { %v737_v50 = vpop.permute.xlu1 %736 }
0x1476   :  { %1896 = vmatmul.mubr.msk.bf16.vlgmr.msra.gmra.mrb[16].mxu0 %vm93_vm2, %v737_v50 }
0x1477   :  { %1911 = vmatprep.mubr.msk.bf16.mxu0 %vm2147_vm0, %v2146_v1  ;;  %1908 = vmatpush3.bf16.msra.mxu0 %v2345_v19 }
0x1478   :  { %1909 = vmatprep.subr.bf16.mxu0 %v2146_v1 }
0x1549   :  { %v775_v51 = vpop.f32.mrb[16].mxu0 }
0x154a   :  { %v782_v52 = vrot.slane %v775_v51, 2  ;;  %v1897_v53 = vpop.f32.mrb[17].mxu0 }
0x154b   :  { %v778_v54 = vpop.f32.mrb[18].mxu0 }
0x154c   :  { %v784_v2 = vadd.f32 %v782_v52, %v2220_v13  ;;  %v1898_v55 = vpop.f32.mrb[19].mxu0  ;;  %v794_v13 = vrot.slane %v713_v35, 6 }
0x154e   :  { %v1720_v56 = vmul.f32 -1.442695, %v784_v2 }
0x1550   :  { %2050 = vpow2.f32 %v1720_v56 }
0x155a   :  { %v2051_v57 = vpop.eup %2050 }
0x155b   :  { %v788_v6 = vadd.f32 1.0, %v2051_v57 }
0x155d   :  { %2052 = vrcp.f32 %v788_v6 }
0x1567   :  { %v2053_v58 = vpop.eup %2052 }
0x1568   :  { %v791_v59 = vmul.f32 2.0, %v2053_v58  ;;  %v796_v11 = vmul.f32 %v2053_v58, %v794_v13 }
0x156a   :  { %v1721_v60 = vadd.f32 -1.0, %v791_v59 }
0x156c   :  { %798 = vrot.lane.b32.xlu0 %v1721_v60, %s2149_s23 }
0x15de   :  { %v799_v61 = vpop.permute.xlu0 %798 }
0x15df   :  { %v801_v62 = vmul.f32 %v2053_v58, %v799_v61 }
0x15e1   :  { %803 = vrot.lane.b32.xlu1 %v801_v62, %s2150_s24 }
0x15e5   :  { %172 = vrot.lane.b32.xlu1 %v2226_v39, %s2150_s24 }
0x15e9   :  { %359 = vrot.lane.b32.xlu1 %v2258_v41, %s2150_s24 }
0x15ed   :  { %544 = vrot.lane.b32.xlu1 %v2290_v44, %s2150_s24 }
0x15f1   :  { %729 = vrot.lane.b32.xlu1 %v727_v47, %s2150_s24 }
0x1653   :  { %v804_v63 = vpop.permute.xlu1 %803 }
0x1654   :  { %v806_v0 = vadd.f32 %v804_v63, %v796_v11 }
0x1656   :  { %v1722_v3 = vmul.f32 -2.0, %v806_v0 }
0x1657   :  { %v173_v4 = vpop.permute.xlu1 %172 }
0x1658   :  { %v809_v5 = vmul.f32 1.442695, %v1722_v3  ;;  %176 = vst.msk [vmem:[#allocation2] sm:$0x3] %vm175_vm3, %v173_v4 }
0x165a   :  { %2054 = vpow2.f32 %v809_v5 }
0x165b   :  { %v360_v39 = vpop.permute.xlu1 %359 }
0x165c   :  { %363 = vst.msk [vmem:[#allocation2] sm:$0x30] %vm362_vm4, %v360_v39 }
0x165f   :  { %v545_v9 = vpop.permute.xlu1 %544 }
0x1660   :  { %547 = vst.msk [vmem:[#allocation2 + $0x8] sm:$0x3] %vm175_vm3, %v545_v9 }
0x1663   :  { %v730_v41 = vpop.permute.xlu1 %729 }
0x1664   :  { %v2055_v10 = vpop.eup %2054  ;;  %732 = vst.msk [vmem:[#allocation2 + $0x8] sm:$0x30] %vm362_vm4, %v730_v41 }
0x1665   :  { %v811_v44 = vadd.f32 1.0, %v2055_v10 }
0x1667   :  { %2056 = vrcp.f32 %v811_v44 }
0x1671   :  { %v2057_v15 = vpop.eup %2056 }
0x1672   :  { %v814_v16 = vmul.f32 2.0, %v2057_v15 }
0x1674   :  { %v1723_v17 = vadd.f32 -1.0, %v814_v16 }
0x1676   :  { %817 = vrot.lane.b32.xlu0 %v1723_v17, %s2149_s23 }
0x167a   :  { %265 = vrot.lane.b32.xlu0 %v2242_v8, %s2150_s24  ;;  %v1990_v8 = vld [vmem:[%s2485_s1 + $0x20] sm:$0xff]  }
0x167b   :  { %1902 = vmatpush3.bf16.msra.mxu1 %v1990_v8 }
0x167c   :  { %1915 = vmatprep.subr.bf16.mxu1 %v2146_v1 }
0x167e   :  { %453 = vrot.lane.b32.xlu0 %v2274_v12, %s2150_s24  ;;  %v2354_v12 = vld [vmem:[%s2485_s1 + $0x30] sm:$0xff]  }
0x167f   :  { %1910 = vmatpush3.bf16.msra.mxu0 %v2354_v12 }
0x1680   :  { %1923 = vmatprep.subr.bf16.mxu0 %v2146_v1 }
0x1682   :  { %636 = vrot.lane.b32.xlu0 %v2306_v14, %s2150_s24  ;;  %1912 = vmatmul.mubr.bf16.vlgmr.msra.gmra.mrb[20].mxu0 %v2148_v7 }
0x1683   :  { %1924 = vmatpush3.bf16.msra.mxu0 %v2345_v19  ;;  %1927 = vmatprep.mubr.msk.bf16.mxu0 %vm2147_vm0, %v2146_v1 }
0x1684   :  { %1925 = vmatprep.subr.bf16.mxu0 %v2146_v1 }
0x1687   :  { %1926 = vmatpush3.bf16.msra.mxu0 %v2354_v12 }
0x1688   :  { %1939 = vmatprep.subr.bf16.mxu0 %v2146_v1 }
0x16e8   :  { %v818_v14 = vpop.permute.xlu0 %817 }
0x16e9   :  { %v820_v20 = vmul.f32 %v2053_v58, %v818_v14 }
0x16eb   :  { %822 = vrot.lane.b32.xlu0 %v820_v20, %s2150_s24 }
0x16ec   :  { %v266_v21 = vpop.permute.xlu0 %265 }
0x16ed   :  { %269 = vst.msk [vmem:[#allocation2] sm:$0xc] %vm268_vm5, %v266_v21 }
0x16f0   :  { %v454_v7 = vpop.permute.xlu0 %453 }
0x16f1   :  { %457 = vst.msk [vmem:[#allocation2] sm:$0xc0] %vm456_vm6, %v454_v7 }
0x16f4   :  { %v637_v22 = vpop.permute.xlu0 %636 }
0x16f5   :  { %639 = vst.msk [vmem:[#allocation2 + $0x8] sm:$0xc] %vm268_vm5, %v637_v22 }
0x16f8   :  { %v835_v24 = vld [vmem:[#allocation2] sm:$0xff] }
0x1755   :  { %v944_v27 = vpop.f32.mrb[20].mxu0 }
0x1756   :  { %v1913_v28 = vpop.f32.mrb[21].mxu0 }
0x1757   :  { %v947_v29 = vpop.f32.mrb[22].mxu0 }
0x1758   :  { %v1914_v30 = vpop.f32.mrb[23].mxu0 }
0x175d   :  { %v823_v23 = vpop.permute.xlu0 %822 }
0x175e   :  { %825 = vst.msk [vmem:[#allocation2 + $0x8] sm:$0xc0] %vm456_vm6, %v823_v23 }
0x1765   :  { %v836_v25 = vld [vmem:[#allocation2 + $0x8] sm:$0xff] }
0x1766   :  { %v837_v26 = vpack.c.bf16 %v836_v25, %v835_v24 }
0x1768   :  { %1904 = vmatmul.mubr.msk.bf16.vlgmr.msra.gmra.mrb[16].mxu1 %vm93_vm2, %v837_v26 }
0x1769   :  { %1916 = vmatpush3.bf16.msra.mxu1 %v2345_v19  ;;  %1919 = vmatprep.mubr.msk.bf16.mxu1 %vm2147_vm0, %v2146_v1 }
0x176a   :  { %1917 = vmatprep.subr.bf16.mxu1 %v2146_v1 }
0x176d   :  { %1918 = vmatpush3.bf16.msra.mxu1 %v2354_v12 }
0x176e   :  { %1931 = vmatprep.subr.bf16.mxu1 %v2146_v1 }
0x183b   :  { %v891_v32 = vpop.f32.mrb[16].mxu1 }
0x183c   :  { %v2379_v33 = vadd.f32 %v1724_v31, %v891_v32  ;;  %v1905_v34 = vpop.f32.mrb[17].mxu1 }
0x183d   :  { %v894_v35 = vpop.f32.mrb[18].mxu1 }
0x183e   :  { %v950_v36 = vadd.f32 %v944_v27, %v2379_v33  ;;  %v2382_v37 = vadd.f32 %v1724_v31, %v894_v35  ;;  %v1906_v38 = vpop.f32.mrb[19].mxu1 }
0x1840   :  { %v1730_v40 = vmul.f32 -1.442695, %v950_v36 }
0x1842   :  { %2058 = vpow2.f32 %v1730_v40 }
0x184c   :  { %v2059_v42 = vpop.eup %2058 }
0x184d   :  { %v954_v43 = vadd.f32 1.0, %v2059_v42 }
0x184f   :  { %2060 = vrcp.f32 %v954_v43 }
0x1859   :  { %v2061_v45 = vpop.eup %2060 }
0x185a   :  { %v957_v46 = vmul.f32 2.0, %v2061_v45  ;;  %v959_v50 = vmul.f32 0.0, %v2061_v45 }
0x185c   :  { %v1731_v47 = vadd.f32 -1.0, %v957_v46 }
0x185e   :  { %961 = vrot.lane.b32.xlu1 %v1731_v47, %s2149_s23 }
0x18d0   :  { %v962_v48 = vpop.permute.xlu1 %961 }
0x18d1   :  { %v964_v49 = vmul.f32 %v2061_v45, %v962_v48 }
0x18d3   :  { %966 = vrot.lane.b32.xlu0 %v964_v49, %s2150_s24 }
0x1945   :  { %v967_v51 = vpop.permute.xlu0 %966 }
0x1946   :  { %v969_v52 = vadd.f32 %v967_v51, %v959_v50 }
0x1948   :  { %v1732_v53 = vmul.f32 -2.0, %v969_v52  ;;  %v1044_v16 = vrot.slane %v969_v52, 6 }
0x194a   :  { %v972_v54 = vmul.f32 1.442695, %v1732_v53 }
0x194c   :  { %2062 = vpow2.f32 %v972_v54 }
0x1956   :  { %v2063_v2 = vpop.eup %2062 }
0x1957   :  { %v974_v55 = vadd.f32 1.0, %v2063_v2 }
0x1959   :  { %2064 = vrcp.f32 %v974_v55 }
0x1963   :  { %v2065_v56 = vpop.eup %2064 }
0x1964   :  { %v977_v57 = vmul.f32 2.0, %v2065_v56 }
0x1966   :  { %v1733_v6 = vadd.f32 -1.0, %v977_v57 }
0x1968   :  { %980 = vrot.lane.b32.xlu1 %v1733_v6, %s2149_s23 }
0x19da   :  { %v981_v58 = vpop.permute.xlu1 %980 }
0x19db   :  { %v983_v59 = vmul.f32 %v2061_v45, %v981_v58 }
0x19dd   :  { %v984_v60 = vpack.c.bf16 %v983_v59, %v983_v59 }
0x19df   :  { %986 = vrot.lane.b32.xlu0 %v984_v60, %s2150_s24 }
0x1a51   :  { %v987_v61 = vpop.permute.xlu0 %986 }
0x1a52   :  { %1920 = vmatmul.mubr.msk.bf16.vlgmr.msra.gmra.mrb[20].mxu1 %vm93_vm2, %v987_v61 }
0x1a53   :  { %1932 = vmatpush3.bf16.msra.mxu1 %v2345_v19  ;;  %1935 = vmatprep.mubr.msk.bf16.mxu1 %vm2147_vm0, %v2146_v1 }
0x1a54   :  { %1933 = vmatprep.subr.bf16.mxu1 %v2146_v1 }
0x1a57   :  { %1934 = vmatpush3.bf16.msra.mxu1 %v2354_v12 }
0x1a58   :  { %1947 = vmatprep.subr.bf16.mxu1 %v2146_v1 }
0x1b25   :  { %v1025_v62 = vpop.f32.mrb[20].mxu1 }
0x1b26   :  { %v1032_v13 = vrot.slane %v1025_v62, 6  ;;  %v1921_v11 = vpop.f32.mrb[21].mxu1 }
0x1b27   :  { %v1028_v63 = vpop.f32.mrb[22].mxu1 }
0x1b28   :  { %v1034_v0 = vadd.f32 %v1032_v13, %v2379_v33  ;;  %v1922_v3 = vpop.f32.mrb[23].mxu1 }
0x1b2a   :  { %v1735_v4 = vmul.f32 -1.442695, %v1034_v0 }
0x1b2c   :  { %2066 = vpow2.f32 %v1735_v4 }
0x1b36   :  { %v2067_v5 = vpop.eup %2066 }
0x1b37   :  { %v1038_v39 = vadd.f32 1.0, %v2067_v5 }
0x1b39   :  { %2068 = vrcp.f32 %v1038_v39 }
0x1b43   :  { %v2069_v9 = vpop.eup %2068 }
0x1b44   :  { %v1041_v41 = vmul.f32 2.0, %v2069_v9  ;;  %v1046_v17 = vmul.f32 %v2069_v9, %v1044_v16 }
0x1b46   :  { %v1736_v10 = vadd.f32 -1.0, %v1041_v41 }
0x1b48   :  { %1048 = vrot.lane.b32.xlu1 %v1736_v10, %s2149_s23 }
0x1bba   :  { %v1049_v44 = vpop.permute.xlu1 %1048 }
0x1bbb   :  { %v1051_v15 = vmul.f32 %v2069_v9, %v1049_v44 }
0x1bbd   :  { %1053 = vrot.lane.b32.xlu0 %v1051_v15, %s2150_s24 }
0x1c2f   :  { %v1054_v18 = vpop.permute.xlu0 %1053 }
0x1c30   :  { %v1056_v8 = vadd.f32 %v1054_v18, %v1046_v17 }
0x1c32   :  { %v1737_v14 = vmul.f32 -2.0, %v1056_v8  ;;  %v1132_v49 = vrot.slane %v1056_v8, 6 }
0x1c34   :  { %v1059_v20 = vmul.f32 1.442695, %v1737_v14 }
0x1c36   :  { %2070 = vpow2.f32 %v1059_v20 }
0x1c40   :  { %v2071_v21 = vpop.eup %2070 }
0x1c41   :  { %v1061_v7 = vadd.f32 1.0, %v2071_v21 }
0x1c43   :  { %2072 = vrcp.f32 %v1061_v7 }
0x1c4d   :  { %v2073_v22 = vpop.eup %2072 }
0x1c4e   :  { %v1064_v23 = vmul.f32 2.0, %v2073_v22 }
0x1c50   :  { %v1738_v24 = vadd.f32 -1.0, %v1064_v23 }
0x1c52   :  { %1067 = vrot.lane.b32.xlu1 %v1738_v24, %s2149_s23 }
0x1cc4   :  { %v1068_v25 = vpop.permute.xlu1 %1067 }
0x1cc5   :  { %v1070_v26 = vmul.f32 %v2069_v9, %v1068_v25 }
0x1cc7   :  { %v1071_v27 = vpack.c.bf16 %v1070_v26, %v1070_v26 }
0x1cc9   :  { %v1073_v28 = vrot.slane %v1071_v27, 1 }
0x1ccb   :  { %1074 = vrot.lane.b32.xlu0 %v1073_v28, %s2150_s24 }
0x1d3d   :  { %v1075_v29 = vpop.permute.xlu0 %1074 }
0x1d3e   :  { %1928 = vmatmul.mubr.msk.bf16.vlgmr.msra.gmra.mrb[24].mxu0 %vm93_vm2, %v1075_v29 }
0x1d3f   :  { %1940 = vmatpush3.bf16.msra.mxu0 %v2345_v19  ;;  %1943 = vmatprep.mubr.msk.bf16.mxu0 %vm2147_vm0, %v2146_v1 }
0x1d40   :  { %1941 = vmatprep.subr.bf16.mxu0 %v2146_v1 }
0x1d43   :  { %1942 = vmatpush3.bf16.msra.mxu0 %v2354_v12 }
0x1d44   :  { %1955 = vmatprep.subr.bf16.mxu0 %v2146_v1 }
0x1e11   :  { %v1113_v30 = vpop.f32.mrb[24].mxu0 }
0x1e12   :  { %v1120_v31 = vrot.slane %v1113_v30, 4  ;;  %v1929_v32 = vpop.f32.mrb[25].mxu0 }
0x1e13   :  { %v1116_v34 = vpop.f32.mrb[26].mxu0 }
0x1e14   :  { %v1122_v35 = vadd.f32 %v1120_v31, %v2379_v33  ;;  %v1930_v36 = vpop.f32.mrb[27].mxu0 }
0x1e16   :  { %v1740_v38 = vmul.f32 -1.442695, %v1122_v35 }
0x1e18   :  { %2074 = vpow2.f32 %v1740_v38 }
0x1e22   :  { %v2075_v40 = vpop.eup %2074 }
0x1e23   :  { %v1126_v42 = vadd.f32 1.0, %v2075_v40 }
0x1e25   :  { %2076 = vrcp.f32 %v1126_v42 }
0x1e2f   :  { %v2077_v43 = vpop.eup %2076 }
0x1e30   :  { %v1129_v45 = vmul.f32 2.0, %v2077_v43  ;;  %v1134_v50 = vmul.f32 %v2077_v43, %v1132_v49 }
0x1e32   :  { %v1741_v46 = vadd.f32 -1.0, %v1129_v45 }
0x1e34   :  { %1136 = vrot.lane.b32.xlu1 %v1741_v46, %s2149_s23 }
0x1ea6   :  { %v1137_v47 = vpop.permute.xlu1 %1136 }
0x1ea7   :  { %v1139_v48 = vmul.f32 %v2077_v43, %v1137_v47 }
0x1ea9   :  { %1141 = vrot.lane.b32.xlu0 %v1139_v48, %s2150_s24 }
0x1f1b   :  { %v1142_v51 = vpop.permute.xlu0 %1141 }
0x1f1c   :  { %v1144_v52 = vadd.f32 %v1142_v51, %v1134_v50 }
0x1f1e   :  { %v1742_v53 = vmul.f32 -2.0, %v1144_v52  ;;  %v1220_v17 = vrot.slane %v1144_v52, 6 }
0x1f20   :  { %v1147_v54 = vmul.f32 1.442695, %v1742_v53 }
0x1f22   :  { %2078 = vpow2.f32 %v1147_v54 }
0x1f2c   :  { %v2079_v2 = vpop.eup %2078 }
0x1f2d   :  { %v1149_v55 = vadd.f32 1.0, %v2079_v2 }
0x1f2f   :  { %2080 = vrcp.f32 %v1149_v55 }
0x1f39   :  { %v2081_v56 = vpop.eup %2080 }
0x1f3a   :  { %v1152_v57 = vmul.f32 2.0, %v2081_v56 }
0x1f3c   :  { %v1743_v6 = vadd.f32 -1.0, %v1152_v57 }
0x1f3e   :  { %1155 = vrot.lane.b32.xlu1 %v1743_v6, %s2149_s23 }
0x1fb0   :  { %v1156_v58 = vpop.permute.xlu1 %1155 }
0x1fb1   :  { %v1158_v59 = vmul.f32 %v2077_v43, %v1156_v58 }
0x1fb3   :  { %v1159_v60 = vpack.c.bf16 %v1158_v59, %v1158_v59 }
0x1fb5   :  { %v1161_v61 = vrot.slane %v1159_v60, 2 }
0x1fb7   :  { %1162 = vrot.lane.b32.xlu0 %v1161_v61, %s2150_s24 }
0x2029   :  { %v1163_v62 = vpop.permute.xlu0 %1162 }
0x202a   :  { %1936 = vmatmul.mubr.msk.bf16.vlgmr.msra.gmra.mrb[24].mxu1 %vm93_vm2, %v1163_v62 }
0x202b   :  { %1948 = vmatpush3.bf16.msra.mxu1 %v2345_v19  ;;  %1951 = vmatprep.mubr.msk.bf16.mxu1 %vm2147_vm0, %v2146_v1 }
0x202c   :  { %1949 = vmatprep.subr.bf16.mxu1 %v2146_v1 }
0x202f   :  { %1950 = vmatpush3.bf16.msra.mxu1 %v2354_v12 }
0x2030   :  { %1963 = vmatprep.subr.bf16.mxu1 %v2146_v1 }
0x20fd   :  { %v1201_v13 = vpop.f32.mrb[24].mxu1 }
0x20fe   :  { %v1208_v11 = vrot.slane %v1201_v13, 2  ;;  %v1937_v63 = vpop.f32.mrb[25].mxu1 }
0x20ff   :  { %v1204_v0 = vpop.f32.mrb[26].mxu1 }
0x2100   :  { %v1210_v3 = vadd.f32 %v1208_v11, %v2379_v33  ;;  %v1938_v4 = vpop.f32.mrb[27].mxu1 }
0x2102   :  { %v1745_v5 = vmul.f32 -1.442695, %v1210_v3 }
0x2104   :  { %2082 = vpow2.f32 %v1745_v5 }
0x210e   :  { %v2083_v39 = vpop.eup %2082 }
0x210f   :  { %v1214_v9 = vadd.f32 1.0, %v2083_v39 }
0x2111   :  { %2084 = vrcp.f32 %v1214_v9 }
0x211b   :  { %v2085_v41 = vpop.eup %2084 }
0x211c   :  { %v1217_v10 = vmul.f32 2.0, %v2085_v41  ;;  %v1222_v18 = vmul.f32 %v2085_v41, %v1220_v17 }
0x211e   :  { %v1746_v44 = vadd.f32 -1.0, %v1217_v10 }
0x2120   :  { %1224 = vrot.lane.b32.xlu1 %v1746_v44, %s2149_s23 }
0x2192   :  { %v1225_v15 = vpop.permute.xlu1 %1224 }
0x2193   :  { %v1227_v16 = vmul.f32 %v2085_v41, %v1225_v15 }
0x2195   :  { %1229 = vrot.lane.b32.xlu0 %v1227_v16, %s2150_s24 }
0x2207   :  { %v1230_v8 = vpop.permute.xlu0 %1229 }
0x2208   :  { %v1232_v14 = vadd.f32 %v1230_v8, %v1222_v18 }
0x220a   :  { %v1747_v33 = vmul.f32 -2.0, %v1232_v14  ;;  %v1305_v48 = vrot.slane %v1232_v14, 6 }
0x220c   :  { %v1235_v20 = vmul.f32 1.442695, %v1747_v33 }
0x220e   :  { %2086 = vpow2.f32 %v1235_v20 }
0x2218   :  { %v2087_v21 = vpop.eup %2086 }
0x2219   :  { %v1237_v7 = vadd.f32 1.0, %v2087_v21 }
0x221b   :  { %2088 = vrcp.f32 %v1237_v7 }
0x2225   :  { %v2089_v22 = vpop.eup %2088 }
0x2226   :  { %v1240_v23 = vmul.f32 2.0, %v2089_v22 }
0x2228   :  { %v1748_v24 = vadd.f32 -1.0, %v1240_v23 }
0x222a   :  { %1243 = vrot.lane.b32.xlu1 %v1748_v24, %s2149_s23 }
0x229c   :  { %v1244_v25 = vpop.permute.xlu1 %1243 }
0x229d   :  { %v1246_v26 = vmul.f32 %v2085_v41, %v1244_v25 }
0x229f   :  { %v1247_v27 = vpack.c.bf16 %v1246_v26, %v1246_v26 }
0x22a1   :  { %v1249_v28 = vrot.slane %v1247_v27, 3 }
0x22a3   :  { %1250 = vrot.lane.b32.xlu0 %v1249_v28, %s2150_s24 }
0x2315   :  { %v1251_v29 = vpop.permute.xlu0 %1250 }
0x2316   :  { %1944 = vmatmul.mubr.msk.bf16.vlgmr.msra.gmra.mrb[28].mxu0 %vm93_vm2, %v1251_v29 }
0x2317   :  { %1956 = vmatpush3.bf16.msra.mxu0 %v2345_v19  ;;  %1959 = vmatprep.mubr.msk.bf16.mxu0 %vm2147_vm0, %v2146_v1 }
0x2318   :  { %1957 = vmatprep.subr.bf16.mxu0 %v2146_v1 }
0x231b   :  { %1958 = vmatpush3.bf16.msra.mxu0 %v2354_v12 }
0x231c   :  { %1971 = vmatprep.subr.bf16.mxu0 %v2146_v1 }
0x23e9   :  { %v1289_v30 = vpop.f32.mrb[28].mxu0 }
0x23ea   :  { %v1295_v31 = vadd.f32 %v1289_v30, %v2382_v37  ;;  %v1945_v32 = vpop.f32.mrb[29].mxu0 }
0x23eb   :  { %v1292_v34 = vpop.f32.mrb[30].mxu0 }
0x23ec   :  { %v1750_v35 = vmul.f32 -1.442695, %v1295_v31  ;;  %v1946_v36 = vpop.f32.mrb[31].mxu0 }
0x23ee   :  { %2090 = vpow2.f32 %v1750_v35 }
0x23f8   :  { %v2091_v38 = vpop.eup %2090 }
0x23f9   :  { %v1299_v40 = vadd.f32 1.0, %v2091_v38 }
0x23fb   :  { %2092 = vrcp.f32 %v1299_v40 }
0x2405   :  { %v2093_v42 = vpop.eup %2092 }
0x2406   :  { %v1302_v43 = vmul.f32 2.0, %v2093_v42  ;;  %v1307_v49 = vmul.f32 %v2093_v42, %v1305_v48 }
0x2408   :  { %v1751_v45 = vadd.f32 -1.0, %v1302_v43 }
0x240a   :  { %1309 = vrot.lane.b32.xlu1 %v1751_v45, %s2149_s23 }
0x247c   :  { %v1310_v46 = vpop.permute.xlu1 %1309 }
0x247d   :  { %v1312_v47 = vmul.f32 %v2093_v42, %v1310_v46 }
0x247f   :  { %1314 = vrot.lane.b32.xlu0 %v1312_v47, %s2150_s24 }
0x24f1   :  { %v1315_v50 = vpop.permute.xlu0 %1314 }
0x24f2   :  { %v1317_v51 = vadd.f32 %v1315_v50, %v1307_v49 }
0x24f4   :  { %v1752_v52 = vmul.f32 -2.0, %v1317_v51 }
0x24f6   :  { %v1320_v53 = vmul.f32 1.442695, %v1752_v52 }
0x24f8   :  { %2094 = vpow2.f32 %v1320_v53 }
0x2502   :  { %v2095_v54 = vpop.eup %2094 }
0x2503   :  { %v1322_v2 = vadd.f32 1.0, %v2095_v54 }
0x2505   :  { %2096 = vrcp.f32 %v1322_v2 }
0x250f   :  { %v2097_v55 = vpop.eup %2096 }
0x2510   :  { %v1325_v56 = vmul.f32 2.0, %v2097_v55 }
0x2512   :  { %v1753_v57 = vadd.f32 -1.0, %v1325_v56 }
0x2514   :  { %1328 = vrot.lane.b32.xlu1 %v1753_v57, %s2149_s23 }
0x2586   :  { %v1329_v6 = vpop.permute.xlu1 %1328 }
0x2587   :  { %v1331_v58 = vmul.f32 %v2093_v42, %v1329_v6 }
0x2589   :  { %v1332_v59 = vpack.c.bf16 %v1331_v58, %v1331_v58 }
0x258b   :  { %1334 = vrot.lane.b32.xlu0 %v1332_v59, %s2150_s24 }
0x25fd   :  { %v1335_v60 = vpop.permute.xlu0 %1334 }
0x25fe   :  { %1952 = vmatmul.mubr.msk.bf16.vlgmr.msra.gmra.mrb[28].mxu1 %vm93_vm2, %v1335_v60 }
0x25ff   :  { %1964 = vmatpush3.bf16.msra.mxu1 %v2345_v19  ;;  %1967 = vmatprep.mubr.msk.bf16.mxu1 %vm2147_vm0, %v2146_v1 }
0x2600   :  { %1965 = vmatprep.subr.bf16.mxu1 %v2146_v1 }
0x2603   :  { %1966 = vmatpush3.bf16.msra.mxu1 %v2354_v12  ;;  %v1392_v12 = vrot.slane %v1317_v51, 6 }
0x26d1   :  { %v1373_v61 = vpop.f32.mrb[28].mxu1 }
0x26d2   :  { %v1380_v62 = vrot.slane %v1373_v61, 6  ;;  %v1953_v13 = vpop.f32.mrb[29].mxu1 }
0x26d3   :  { %v1376_v11 = vpop.f32.mrb[30].mxu1 }
0x26d4   :  { %v1382_v63 = vadd.f32 %v1380_v62, %v2382_v37  ;;  %v1954_v0 = vpop.f32.mrb[31].mxu1 }
0x26d6   :  { %v1755_v3 = vmul.f32 -1.442695, %v1382_v63 }
0x26d8   :  { %2098 = vpow2.f32 %v1755_v3 }
0x26e2   :  { %v2099_v4 = vpop.eup %2098 }
0x26e3   :  { %v1386_v5 = vadd.f32 1.0, %v2099_v4 }
0x26e5   :  { %2100 = vrcp.f32 %v1386_v5 }
0x26ef   :  { %v2101_v19 = vpop.eup %2100 }
0x26f0   :  { %v1389_v39 = vmul.f32 2.0, %v2101_v19  ;;  %v1394_v44 = vmul.f32 %v2101_v19, %v1392_v12 }
0x26f2   :  { %v1756_v9 = vadd.f32 -1.0, %v1389_v39 }
0x26f4   :  { %1396 = vrot.lane.b32.xlu1 %v1756_v9, %s2149_s23 }
0x2766   :  { %v1397_v41 = vpop.permute.xlu1 %1396 }
0x2767   :  { %v1399_v10 = vmul.f32 %v2101_v19, %v1397_v41 }
0x2769   :  { %1401 = vrot.lane.b32.xlu0 %v1399_v10, %s2150_s24 }
0x27db   :  { %v1402_v15 = vpop.permute.xlu0 %1401 }
0x27dc   :  { %v1404_v16 = vadd.f32 %v1402_v15, %v1394_v44 }
0x27de   :  { %v1757_v17 = vmul.f32 -2.0, %v1404_v16  ;;  %v1480_v45 = vrot.slane %v1404_v16, 6 }
0x27e0   :  { %v1407_v18 = vmul.f32 1.442695, %v1757_v17 }
0x27e2   :  { %2102 = vpow2.f32 %v1407_v18  ;;  %v1992_v18 = vld [vmem:[%s2485_s1 + $0x38] sm:$0xff]  }
0x27ec   :  { %v2103_v8 = vpop.eup %2102 }
0x27ed   :  { %v1409_v14 = vadd.f32 1.0, %v2103_v8 }
0x27ef   :  { %2104 = vrcp.f32 %v1409_v14  ;;  %v1993_v14 = vld [vmem:[%s2485_s1 + $0x40] sm:$0xff]   ;;  %s2151_s1 = smov [#allocation3]  }
0x27f0   :  { %s1672_s14 = sshll.u32 %s2151_s1, 4  ;;  %s1673_s14 = int_to_ptr.vmem [resolvable:$true] %s1672_s14 }
0x27f1   :  { %s2122_s15 = scalar_lea.vmem %s1673_s14, 32  ;;  %p2127_p1 = scmp.lt.s32.totalorder %s1673_s14, %s1673_s14 }
0x27f2   :  { %p2123_p0 = scmp.ne.s32.totalorder %s1673_s14, %s2122_s15  ;;  %p2128_p2 = scmp.lt.s32.totalorder %s2122_s15, %s2122_s15 }
0x27f4   :  { %p2129_p3 = por %p2128_p2, %p2127_p1 }
0x27f6   :  { %p2130_p4 = pnand %p2129_p3, %p2123_p0 }
0x27f9   :  { %v2105_v33 = vpop.eup %2104 }
0x27fa   :  { %v1412_v20 = vmul.f32 2.0, %v2105_v33 }
0x27fc   :  { %v1758_v21 = vadd.f32 -1.0, %v1412_v20 }
0x27fe   :  { %1415 = vrot.lane.b32.xlu1 %v1758_v21, %s2149_s23 }
0x2870   :  { %v1416_v7 = vpop.permute.xlu1 %1415 }
0x2871   :  { %v1418_v22 = vmul.f32 %v2101_v19, %v1416_v7 }
0x2873   :  { %v1419_v23 = vpack.c.bf16 %v1418_v22, %v1418_v22 }
0x2875   :  { %v1421_v24 = vrot.slane %v1419_v23, 1 }
0x2877   :  { %1422 = vrot.lane.b32.xlu0 %v1421_v24, %s2150_s24 }
0x28e9   :  { %v1423_v25 = vpop.permute.xlu0 %1422 }
0x28ea   :  { %1960 = vmatmul.mubr.msk.bf16.vlgmr.msra.gmra.mrb[32].mxu0 %vm93_vm2, %v1423_v25  ;;  %v1769_v25 = vld [vmem:[%s2486_s2 + $0x2] ss:$0 sm:$0xff] }
0x28eb   :  { %1975 = vmatprep.mubr.msk.bf16.mxu0 %vm2147_vm0, %v2146_v1  ;;  %1972 = vmatpush3.bf16.msra.mxu0 %v1992_v18 }
0x28ec   :  { %1973 = vmatprep.subr.bf16.mxu0 %v2146_v1 }
0x28ef   :  { %1974 = vmatpush3.bf16.msra.mxu0 %v1993_v14 }
0x29bd   :  { %v1461_v26 = vpop.f32.mrb[32].mxu0 }
0x29be   :  { %v1468_v27 = vrot.slane %v1461_v26, 4  ;;  %v1961_v28 = vpop.f32.mrb[33].mxu0 }
0x29bf   :  { %v1464_v29 = vpop.f32.mrb[34].mxu0 }
0x29c0   :  { %v1470_v30 = vadd.f32 %v1468_v27, %v2382_v37  ;;  %v1962_v31 = vpop.f32.mrb[35].mxu0 }
0x29c2   :  { %v1760_v32 = vmul.f32 -1.442695, %v1470_v30 }
0x29c4   :  { %2106 = vpow2.f32 %v1760_v32 }
0x29ce   :  { %v2107_v34 = vpop.eup %2106 }
0x29cf   :  { %v1474_v35 = vadd.f32 1.0, %v2107_v34 }
0x29d1   :  { %2108 = vrcp.f32 %v1474_v35 }
0x29db   :  { %v2109_v36 = vpop.eup %2108 }
0x29dc   :  { %v1477_v38 = vmul.f32 2.0, %v2109_v36  ;;  %v1482_v46 = vmul.f32 %v2109_v36, %v1480_v45 }
0x29de   :  { %v1761_v40 = vadd.f32 -1.0, %v1477_v38 }
0x29e0   :  { %1484 = vrot.lane.b32.xlu1 %v1761_v40, %s2149_s23 }
0x2a52   :  { %v1485_v42 = vpop.permute.xlu1 %1484 }
0x2a53   :  { %v1487_v43 = vmul.f32 %v2109_v36, %v1485_v42 }
0x2a55   :  { %1489 = vrot.lane.b32.xlu0 %v1487_v43, %s2150_s24 }
0x2ac7   :  { %v1490_v47 = vpop.permute.xlu0 %1489 }
0x2ac8   :  { %v1492_v48 = vadd.f32 %v1490_v47, %v1482_v46 }
0x2aca   :  { %v1762_v49 = vmul.f32 -2.0, %v1492_v48  ;;  %v1568_v41 = vrot.slane %v1492_v48, 6 }
0x2acc   :  { %v1495_v50 = vmul.f32 1.442695, %v1762_v49 }
0x2ace   :  { %2110 = vpow2.f32 %v1495_v50 }
0x2ad8   :  { %v2111_v51 = vpop.eup %2110 }
0x2ad9   :  { %v1497_v52 = vadd.f32 1.0, %v2111_v51 }
0x2adb   :  { %2112 = vrcp.f32 %v1497_v52 }
0x2ae5   :  { %v2113_v53 = vpop.eup %2112 }
0x2ae6   :  { %v1500_v54 = vmul.f32 2.0, %v2113_v53 }
0x2ae8   :  { %v1763_v2 = vadd.f32 -1.0, %v1500_v54 }
0x2aea   :  { %1503 = vrot.lane.b32.xlu1 %v1763_v2, %s2149_s23 }
0x2b5c   :  { %v1504_v55 = vpop.permute.xlu1 %1503 }
0x2b5d   :  { %v1506_v56 = vmul.f32 %v2109_v36, %v1504_v55 }
0x2b5f   :  { %v1507_v57 = vpack.c.bf16 %v1506_v56, %v1506_v56 }
0x2b61   :  { %v1509_v6 = vrot.slane %v1507_v57, 2 }
0x2b63   :  { %1510 = vrot.lane.b32.xlu0 %v1509_v6, %s2150_s24 }
0x2bd5   :  { %v1511_v58 = vpop.permute.xlu0 %1510 }
0x2bd6   :  { %1968 = vmatmul.mubr.msk.bf16.vlgmr.msra.gmra.mrb[32].mxu1 %vm93_vm2, %v1511_v58 }
0x2ca9   :  { %v1549_v59 = vpop.f32.mrb[32].mxu1 }
0x2caa   :  { %v1556_v60 = vrot.slane %v1549_v59, 2  ;;  %v1969_v61 = vpop.f32.mrb[33].mxu1 }
0x2cab   :  { %v1552_v62 = vpop.f32.mrb[34].mxu1 }
0x2cac   :  { %v1558_v13 = vadd.f32 %v1556_v60, %v2382_v37  ;;  %v1970_v11 = vpop.f32.mrb[35].mxu1 }
0x2cae   :  { %v1765_v63 = vmul.f32 -1.442695, %v1558_v13 }
0x2cb0   :  { %2114 = vpow2.f32 %v1765_v63 }
0x2cba   :  { %v2115_v0 = vpop.eup %2114 }
0x2cbb   :  { %v1562_v3 = vadd.f32 1.0, %v2115_v0 }
0x2cbd   :  { %2116 = vrcp.f32 %v1562_v3 }
0x2cc7   :  { %v2117_v4 = vpop.eup %2116 }
0x2cc8   :  { %v1565_v5 = vmul.f32 2.0, %v2117_v4  ;;  %v1570_v10 = vmul.f32 %v2117_v4, %v1568_v41 }
0x2cca   :  { %v1766_v19 = vadd.f32 -1.0, %v1565_v5 }
0x2ccc   :  { %1572 = vrot.lane.b32.xlu1 %v1766_v19, %s2149_s23 }
0x2d3e   :  { %v1573_v39 = vpop.permute.xlu1 %1572 }
0x2d3f   :  { %v1575_v9 = vmul.f32 %v2117_v4, %v1573_v39 }
0x2d41   :  { %1577 = vrot.lane.b32.xlu0 %v1575_v9, %s2150_s24 }
0x2db3   :  { %v1578_v12 = vpop.permute.xlu0 %1577 }
0x2db4   :  { %v1580_v44 = vadd.f32 %v1578_v12, %v1570_v10 }
0x2db6   :  { %v1767_v37 = vmul.f32 -2.0, %v1580_v44 }
0x2db8   :  { %v1583_v15 = vmul.f32 1.442695, %v1767_v37 }
0x2dba   :  { %2118 = vpow2.f32 %v1583_v15 }
0x2dc4   :  { %v2119_v16 = vpop.eup %2118 }
0x2dc5   :  { %v1585_v17 = vadd.f32 1.0, %v2119_v16 }
0x2dc7   :  { %2120 = vrcp.f32 %v1585_v17 }
0x2dd1   :  { %v2121_v8 = vpop.eup %2120 }
0x2dd2   :  { %v1588_v33 = vmul.f32 2.0, %v2121_v8 }
0x2dd4   :  { %v1768_v20 = vadd.f32 -1.0, %v1588_v33 }
0x2dd6   :  { %1591 = vrot.lane.b32.xlu1 %v1768_v20, %s2149_s23 }
0x2e48   :  { %v1592_v21 = vpop.permute.xlu1 %1591 }
0x2e49   :  { %v1594_v7 = vmul.f32 %v2117_v4, %v1592_v21 }
0x2e4b   :  { %v1600_v22 = vpack.c.bf16 %v1594_v7, %v1594_v7 }
0x2e4d   :  { %v1606_v23 = vrot.slane %v1600_v22, 3 }
0x2e4f   :  { %1607 = vrot.lane.b32.xlu0 %v1606_v23, %s2150_s24 }
0x2ec1   :  { %v1608_v24 = vpop.permute.xlu0 %1607 }
0x2ec2   :  { %1976 = vmatmul.mubr.msk.bf16.vlgmr.msra.gmra.mrb[36].mxu0 %vm93_vm2, %v1608_v24 }
0x2f95   :  { %v1658_v1 = vpop.f32.mrb[36].mxu0 }
0x2f96   :  { %v1659_v26 = vadd.f32 %v1769_v25, %v1658_v1  ;;  %v1977_v27 = vpop.f32.mrb[37].mxu0 }
0x2f97   :  { %v1661_v28 = vpop.f32.mrb[38].mxu0 }
0x2f98   :  { %v1978_v29 = vpop.f32.mrb[39].mxu0  ;;  %1665 = vst.msk [vmem:[#allocation3] sm:$0x3] %vm1664_vm7, %v1659_v26 }
0x2f99   :  { %2133 = shalt.err (!%p2130_p4)
}
0x2f9a   :  { %s2134_s2 = scalar_lea.hbm %s2487_s3, 32 }
0x2f9b   :  { %p2135_p5 = scmp.ne.s32.totalorder %s2487_s3, %s2134_s2  ;;  %p2138_p6 = scmp.lt.u32.totalorder %s2134_s2, %s2487_s3 }
0x2f9d   :  { %p2140_p7 = pnand %p2138_p6, %p2135_p5 }
0x2f9f   :  { %2143 = shalt.err (!%p2140_p7)
}
0x2fa0   :  { %1675 = dma.vmem_to_hbm [thread:$0]  %s1673_s14, 32, %s2487_s3, [#allocation4]  }
0x2fa1   :  { %2144 = dma.done.wait [#allocation4], 32  }
0x2fa2   :  { %2145 = vsyncadd [#allocation4], 4294967264 }
0x2fa3   :  { %1679 = vsyncpa [#allocation4], 1 }

</bundles_post_ra>
